<compile_context>
chip_gen: v7x
topology: tpu7x:2x2x1
jax: 0.10.0
libtpu: 0.0.40
codegen_flags: <defaults>
</compile_context>

<pallas_src>
import functools

import jax
import jax.numpy as jnp
import numpy as np
from jax.experimental import pallas as pl
from jax.experimental.pallas import tpu as pltpu

_EPS = 1e-5
_LANE = 128
_IOFF = 8              # sublane-aligned interior column offset in pad scratch


def _round_up(x, m):
    return ((x + m - 1) // m) * m


def _pad_axis(a, target, axis):
    cur = a.shape[axis]
    if cur == target:
        return a
    widths = [(0, 0)] * a.ndim
    widths[axis] = (0, target - cur)
    return jnp.pad(a, widths)


def _vmem_capacity_bytes():
    try:
        info = pltpu.get_tpu_info()
        cap = getattr(info, "vmem_capacity_bytes", None)
        if cap:
            return int(cap)
    except Exception:
        pass
    return 64 * 1024 * 1024            # conservative: v7x per-TensorCore VMEM


# ----------------------------- Pallas kernel --------------------------------
def _bottleneck_kernel(x_ref, w1_ref, b1_ref, w2_ref, b2_ref,
                       w3_ref, b3_ref, *rest, k_l, has_proj, ioff):
    if has_proj:
        wsk_ref, bsk_ref, o_ref, pad_ref = rest
    else:
        o_ref, pad_ref = rest

    Bt, H, W, Cin = x_ref.shape
    Cr = w1_ref.shape[1]
    Cexp = w3_ref.shape[1]
    M = Bt * H * W

    xf = x_ref[...].reshape(M, Cin)                       # bf16, lane-dense

    # conv1: 1x1 (BN scale folded into w1) + shift + ReLU
    y1 = jnp.dot(xf, w1_ref[...], preferred_element_type=jnp.float32)
    y1 = jnp.maximum(y1 + b1_ref[...], 0.0)

    # conv2: 3x3 pad=1 as a single im2col matmul on a zero-halo scratch.
    # Interior lives at columns [ioff, ioff+W); halos at ioff-1 / ioff+W.
    # Only the 1-wide halo is zeroed (interior fully rewritten every step);
    # unconditional so it stays correct under megacore sharding.
    zrow = jnp.zeros((Bt, 1, W + 2, Cr), pad_ref.dtype)
    zcol = jnp.zeros((Bt, H, 1, Cr), pad_ref.dtype)
    pad_ref[:, 0:1, ioff - 1:ioff + W + 1, :] = zrow
    pad_ref[:, H + 1:H + 2, ioff - 1:ioff + W + 1, :] = zrow
    pad_ref[:, 1:H + 1, ioff - 1:ioff, :] = zcol
    pad_ref[:, 1:H + 1, ioff + W:ioff + W + 1, :] = zcol
    pad_ref[:, 1:H + 1, ioff:ioff + W, :] = (
        y1.astype(jnp.bfloat16).reshape(Bt, H, W, Cr))

    taps = [pad_ref[:, dy:dy + H, ioff - 1 + dx:ioff - 1 + dx + W, :]
            for dy in range(3) for dx in range(3)]
    patches = jnp.concatenate(taps, axis=-1).reshape(M, 9 * Cr)     # bf16
    y2 = jnp.dot(patches, w2_ref[...], preferred_element_type=jnp.float32)
    y2 = jnp.maximum(y2 + b2_ref[...], 0.0).astype(jnp.bfloat16)

    # conv3: 1x1 (BN scale folded) + shift, no ReLU yet
    y3 = jnp.dot(y2, w3_ref[...], preferred_element_type=jnp.float32)
    y3 = y3 + b3_ref[...]

    # skip connection
    if has_proj:
        sk = jnp.dot(xf, wsk_ref[...], preferred_element_type=jnp.float32)
        sk = sk + bsk_ref[...]
    else:
        sk = xf                        # identity skip, stays bf16 until the add

    out = jnp.maximum(y3 + k_l * sk.astype(jnp.float32), 0.0)
    o_ref[...] = out.reshape(Bt, H, W, Cexp).astype(o_ref.dtype)


# --------------------------- parameter helpers -------------------------------
def init_params(key, in_channels, out_channels):
    """Deterministic synthetic parameters, in PyTorch (OIHW / BN) layouts."""
    red = out_channels // 4
    cexp = out_channels * 4
    ks = jax.random.split(key, 8)

    def conv_w(k, cout, cin, kh, kw):
        return 0.1 * jax.random.normal(k, (cout, cin, kh, kw), jnp.float32)

    def bn_p(k, c):
        k1, k2, k3, k4 = jax.random.split(k, 4)
        gamma = jax.random.uniform(k1, (c,), jnp.float32, 0.5, 1.5)
        beta = 0.1 * jax.random.normal(k2, (c,), jnp.float32)
        mean = 0.1 * jax.random.normal(k3, (c,), jnp.float32)
        var = jax.random.uniform(k4, (c,), jnp.float32, 0.5, 1.5)
        return gamma, beta, mean, var

    p = {
        "w1": conv_w(ks[0], red, in_channels, 1, 1), "bn1": bn_p(ks[1], red),
        "w2": conv_w(ks[2], red, red, 3, 3),         "bn2": bn_p(ks[3], red),
        "w3": conv_w(ks[4], cexp, red, 1, 1),        "bn3": bn_p(ks[5], cexp),
    }
    if in_channels != cexp:
        p["wsk"] = conv_w(ks[6], cexp, in_channels, 1, 1)
        p["bnsk"] = bn_p(ks[7], cexp)
    return p


def _bn_scale_shift(bn):
    gamma, beta, mean, var = bn
    scale = gamma / jnp.sqrt(var + _EPS)
    shift = beta - mean * scale
    return scale, shift


def _prep_1x1(w_oihw, scale, cin_p, cout_p):
    w = w_oihw[:, :, 0, 0].astype(jnp.float32) * scale[:, None]   # fold BN scale
    w = w.T                                                        # (I, O)
    w = _pad_axis(_pad_axis(w, cin_p, 0), cout_p, 1)
    return w.astype(jnp.bfloat16)


def _prep_3x3(w_oihw, scale, cr_p):
    w = w_oihw.astype(jnp.float32) * scale[:, None, None, None]    # fold BN scale
    w = jnp.transpose(w, (2, 3, 1, 0))                             # (kh, kw, I, O)
    w = _pad_axis(_pad_axis(w, cr_p, 2), cr_p, 3).reshape(9 * cr_p, cr_p)
    return w.astype(jnp.bfloat16)


def _prep_shift(shift, c_p):
    return _pad_axis(shift, c_p, 0)[None, :].astype(jnp.float32)


# ------------------------------- wrapper -------------------------------------
def resnet_block_bottleneck(x_nchw, params, in_channels, out_channels,
                            stride=1, k_l=1.0):
    red = out_channels // 4
    cexp = out_channels * 4
    cin_p = _round_up(in_channels, _LANE)
    cr_p = _round_up(red, _LANE)
    cexp_p = _round_up(cexp, _LANE)

    has_proj = "wsk" in params
    if stride > 1 and not has_proj:
        raise ValueError("identity skip with stride>1 is not supported "
                         "(spatial shapes of y and x would mismatch)")

    # Cast to bf16 FIRST, then transpose / stride-subsample / channel-pad
    # (halves the XLA preprocessing traffic; bit-identical result).
    x = jnp.transpose(x_nchw.astype(jnp.bfloat16), (0, 2, 3, 1))   # NCHW->NHWC
    if stride > 1:
        x = x[:, ::stride, ::stride, :]     # strided 1x1 conv == subsample + 1x1
    x = _pad_axis(x, cin_p, 3)
    N, H, W, _ = x.shape

    s1, sh1 = _bn_scale_shift(params["bn1"])
    s2, sh2 = _bn_scale_shift(params["bn2"])
    s3, sh3 = _bn_scale_shift(params["bn3"])
    w1 = _prep_1x1(params["w1"], s1, cin_p, cr_p)
    w2 = _prep_3x3(params["w2"], s2, cr_p)
    w3 = _prep_1x1(params["w3"], s3, cr_p, cexp_p)
    b1, b2, b3 = (_prep_shift(sh1, cr_p), _prep_shift(sh2, cr_p),
                  _prep_shift(sh3, cexp_p))

    inputs = [x, w1, b1, w2, b2, w3, b3]

    def const2d(shape):
        return pl.BlockSpec(shape, lambda n: (0, 0))

    weight_specs = [
        const2d((cin_p, cr_p)), const2d((1, cr_p)),
        const2d((9 * cr_p, cr_p)), const2d((1, cr_p)),
        const2d((cr_p, cexp_p)), const2d((1, cexp_p)),
    ]
    if has_proj:
        ssk, shsk = _bn_scale_shift(params["bnsk"])
        wsk = _prep_1x1(params["wsk"], ssk, cin_p, cexp_p)
        bsk = _prep_shift(shsk, cexp_p)
        inputs += [wsk, bsk]
        weight_specs += [const2d((cin_p, cexp_p)), const2d((1, cexp_p))]

    # Padded-conv scratch width: interior at sublane-aligned offset _IOFF.
    wpad = _round_up(_IOFF + W + 1, 8)

    # ---- VMEM-aware batch-tile (bt) selection --------------------------------
    def vmem_est(bt):
        m = bt * H * W
        bf, f32 = 2, 4
        b = 2 * bt * H * W * cin_p * bf            # input block (double-buffered)
        b += 2 * bt * H * W * cexp_p * bf          # output block (double-buffered)
        b += bt * (H + 2) * wpad * cr_p * bf       # padded conv2 scratch
        b += m * 9 * cr_p * bf                     # im2col patches
        b += m * cr_p * f32 * 2                    # y1 / y2 f32 accumulators
        b += m * cexp_p * (f32 * (2 if has_proj else 1) + bf)   # y3 / sk / out
        b += 2 * bf * (cin_p * cr_p + 9 * cr_p * cr_p + cr_p * cexp_p
                       + (cin_p * cexp_p if has_proj else 0))   # resident weights
        return b + (1 << 20)                       # slack for compiler temps

    vmem_cap = _vmem_capacity_bytes()
    vmem_budget = int(vmem_cap * 0.70)

    divisors = [d for d in range(1, N + 1) if N % d == 0]
    feasible = [d for d in divisors if vmem_est(d) <= vmem_budget] or [1]
    # Keep grid >= 2 whenever N allows: both v7x cores busy + DMA pipelining.
    preferred = [d for d in feasible if N // d >= 2] or feasible
    # Prefer enough rows per step to feed the 256-deep MXU / amortize overhead.
    big_enough = [d for d in preferred if d * H * W >= 1024]
    bt = min(big_enough) if big_enough else max(preferred)

    vmem_limit = int(min(vmem_cap, max(vmem_budget, vmem_est(bt) + (8 << 20))))

    grid_spec = pltpu.PrefetchScalarGridSpec(
        num_scalar_prefetch=0,
        grid=(N // bt,),
        in_specs=[pl.BlockSpec((bt, H, W, cin_p), lambda n: (n, 0, 0, 0))]
                 + weight_specs,
        out_specs=pl.BlockSpec((bt, H, W, cexp_p), lambda n: (n, 0, 0, 0)),
        scratch_shapes=[pltpu.VMEM((bt, H + 2, wpad, cr_p), jnp.bfloat16)],
    )

    out_nhwc = pl.pallas_call(
        functools.partial(_bottleneck_kernel, k_l=float(k_l),
                          has_proj=has_proj, ioff=_IOFF),
        out_shape=jax.ShapeDtypeStruct((N, H, W, cexp_p), jnp.bfloat16),
        grid_spec=grid_spec,
        compiler_params=pltpu.CompilerParams(
            dimension_semantics=("parallel",),
            vmem_limit_bytes=vmem_limit),
    )(*inputs)

    # Slice padded channels + NHWC->NCHW + widen to f32 in one fused XLA op.
    # TODO(synk): keep the surrounding model NHWC/bf16 end-to-end to drop this.
    return jnp.transpose(out_nhwc[..., :cexp], (0, 3, 1, 2)).astype(jnp.float32)


# ------------------------ pure-JAX reference (check) -------------------------
def reference_forward(x_nchw, params, in_channels, out_channels,
                      stride=1, k_l=1.0):
    x = jnp.transpose(x_nchw, (0, 2, 3, 1)).astype(jnp.float32)
    dn = ("NHWC", "OIHW", "NHWC")

    def conv(y, w, strides, padding):
        return jax.lax.conv_general_dilated(
            y, w, window_strides=strides, padding=padding,
            dimension_numbers=dn, precision=jax.lax.Precision.HIGHEST)

    def bn(y, p):
        gamma, beta, mean, var = p
        return gamma * (y - mean) / jnp.sqrt(var + _EPS) + beta

    y = jax.nn.relu(bn(conv(x, params["w1"], (stride, stride), "VALID"),
                       params["bn1"]))
    y = jax.nn.relu(bn(conv(y, params["w2"], (1, 1), [(1, 1), (1, 1)]),
                       params["bn2"]))
    y = bn(conv(y, params["w3"], (1, 1), "VALID"), params["bn3"])
    if "wsk" in params:
        sk = bn(conv(x, params["wsk"], (stride, stride), "VALID"),
                params["bnsk"])
    else:
        sk = x
    out = jax.nn.relu(y + k_l * sk)
    return jnp.transpose(out, (0, 3, 1, 2))


# --------------------------------- main ---------------------------------------
if __name__ == "__main__":
    key = jax.random.PRNGKey(0)
    ks = jax.random.split(key, 6)

    def run_case(kx, kp, N, cin, H, W, cout, stride, k_l):
        x = jax.random.normal(kx, (N, cin, H, W), jnp.float32)       # NCHW
        params = init_params(kp, cin, cout)
        out = jax.block_until_ready(
            resnet_block_bottleneck(x, params, cin, cout, stride=stride, k_l=k_l))
        ref = reference_forward(x, params, cin, cout, stride=stride, k_l=k_l)
        np.testing.assert_allclose(np.asarray(out), np.asarray(ref),
                                   rtol=2e-2, atol=2e-2)

    # projection skip, stride 1
    run_case(ks[0], ks[1], N=2, cin=16, H=8, W=8, cout=16, stride=1, k_l=1.0)
    # identity skip (in_channels == out_channels * 4)
    run_case(ks[2], ks[3], N=2, cin=64, H=8, W=8, cout=16, stride=1, k_l=0.5)
    # projection skip with stride 2
    run_case(ks[4], ks[5], N=2, cin=16, H=16, W=16, cout=16, stride=2, k_l=1.0)

    print("KERNEL_OK")
</pallas_src>

<mosaic_0001>
module attributes {stable_mosaic.version = 11 : i64} {
  func.func @_bottleneck_kernel(%arg0: i32, %arg1: memref<1x8x8x128xbf16, #tpu.memory_space<vmem>>, %arg2: memref<128x128xbf16, #tpu.memory_space<vmem>>, %arg3: memref<1x128xf32, #tpu.memory_space<vmem>>, %arg4: memref<1152x128xbf16, #tpu.memory_space<vmem>>, %arg5: memref<1x128xf32, #tpu.memory_space<vmem>>, %arg6: memref<128x128xbf16, #tpu.memory_space<vmem>>, %arg7: memref<1x128xf32, #tpu.memory_space<vmem>>, %arg8: memref<128x128xbf16, #tpu.memory_space<vmem>>, %arg9: memref<1x128xf32, #tpu.memory_space<vmem>>, %arg10: memref<1x8x8x128xbf16, #tpu.memory_space<vmem>>, %arg11: memref<1x10x24x128xbf16, #tpu.memory_space<vmem>>) attributes {dimension_semantics = [#tpu.dimension_semantics<parallel>], iteration_bounds = array<i64: 2>, scalar_prefetch = 0 : i64, scratch_operands = 1 : i64, tpu.core_type = #tpu.core_type<tc>, window_params = [{transform_indices = @transform_0, window_bounds = array<i64: 1, 8, 8, 128>}, {pipeline_mode = #tpu.pipeline_mode<synchronous>, transform_indices = @transform_1, window_bounds = array<i64: 128, 128>}, {pipeline_mode = #tpu.pipeline_mode<synchronous>, transform_indices = @transform_2, window_bounds = array<i64: 1, 128>}, {pipeline_mode = #tpu.pipeline_mode<synchronous>, transform_indices = @transform_3, window_bounds = array<i64: 1152, 128>}, {pipeline_mode = #tpu.pipeline_mode<synchronous>, transform_indices = @transform_4, window_bounds = array<i64: 1, 128>}, {pipeline_mode = #tpu.pipeline_mode<synchronous>, transform_indices = @transform_5, window_bounds = array<i64: 128, 128>}, {pipeline_mode = #tpu.pipeline_mode<synchronous>, transform_indices = @transform_6, window_bounds = array<i64: 1, 128>}, {pipeline_mode = #tpu.pipeline_mode<synchronous>, transform_indices = @transform_7, window_bounds = array<i64: 128, 128>}, {pipeline_mode = #tpu.pipeline_mode<synchronous>, transform_indices = @transform_8, window_bounds = array<i64: 1, 128>}, {transform_indices = @transform_9, window_bounds = array<i64: 1, 8, 8, 128>}]} {
    %c0 = arith.constant 0 : index
    %c0_0 = arith.constant 0 : index
    %c0_1 = arith.constant 0 : index
    %c0_2 = arith.constant 0 : index
    %0 = vector.load %arg1[%c0, %c0_0, %c0_1, %c0_2] : memref<1x8x8x128xbf16, #tpu.memory_space<vmem>>, vector<1x8x8x128xbf16>
    %1 = vector.shape_cast %0 : vector<1x8x8x128xbf16> to vector<64x128xbf16>
    %c0_3 = arith.constant 0 : index
    %c0_4 = arith.constant 0 : index
    %2 = vector.load %arg2[%c0_3, %c0_4] : memref<128x128xbf16, #tpu.memory_space<vmem>>, vector<128x128xbf16>
    %cst = arith.constant dense<0.000000e+00> : vector<64x128xf32>
    %3 = tpu.matmul %1, %2, %cst {dimension_numbers = #tpu.dot_dimension_numbers<[1], [0], [0], [1], [0, 0, 1, 1], [], []>} : vector<64x128xbf16>, vector<128x128xbf16>, vector<64x128xf32> -> vector<64x128xf32>
    %c0_5 = arith.constant 0 : index
    %c0_6 = arith.constant 0 : index
    %4 = vector.load %arg3[%c0_5, %c0_6] : memref<1x128xf32, #tpu.memory_space<vmem>>, vector<1x128xf32>
    %5 = vector.broadcast %4 : vector<1x128xf32> to vector<64x128xf32>
    %6 = arith.addf %3, %5 : vector<64x128xf32>
    %cst_7 = arith.constant 0.000000e+00 : f32
    %7 = vector.broadcast %cst_7 : f32 to vector<64x128xf32>
    %8 = arith.maximumf %6, %7 : vector<64x128xf32>
    %cst_8 = arith.constant 0.000000e+00 : bf16
    %9 = vector.broadcast %cst_8 : bf16 to vector<1x1x10x128xbf16>
    %cst_9 = arith.constant 0.000000e+00 : bf16
    %10 = vector.broadcast %cst_9 : bf16 to vector<1x8x1x128xbf16>
    %c0_10 = arith.constant 0 : index
    %c0_11 = arith.constant 0 : index
    %c7 = arith.constant 7 : index
    %c0_12 = arith.constant 0 : index
    %11 = vector.load %arg11[%c0_10, %c0_11, %c7, %c0_12] : memref<1x10x24x128xbf16, #tpu.memory_space<vmem>>, vector<1x1x10x128xbf16>
    tpu.vector_store %arg11[%c0_10, %c0_11, %c7, %c0_12], %9 {strides = array<i32>} : memref<1x10x24x128xbf16, #tpu.memory_space<vmem>>, vector<1x1x10x128xbf16>,
    %c0_13 = arith.constant 0 : index
    %c9 = arith.constant 9 : index
    %c7_14 = arith.constant 7 : index
    %c0_15 = arith.constant 0 : index
    %12 = vector.load %arg11[%c0_13, %c9, %c7_14, %c0_15] : memref<1x10x24x128xbf16, #tpu.memory_space<vmem>>, vector<1x1x10x128xbf16>
    tpu.vector_store %arg11[%c0_13, %c9, %c7_14, %c0_15], %9 {strides = array<i32>} : memref<1x10x24x128xbf16, #tpu.memory_space<vmem>>, vector<1x1x10x128xbf16>,
    %c0_16 = arith.constant 0 : index
    %c1 = arith.constant 1 : index
    %c7_17 = arith.constant 7 : index
    %c0_18 = arith.constant 0 : index
    %13 = vector.load %arg11[%c0_16, %c1, %c7_17, %c0_18] : memref<1x10x24x128xbf16, #tpu.memory_space<vmem>>, vector<1x8x1x128xbf16>
    tpu.vector_store %arg11[%c0_16, %c1, %c7_17, %c0_18], %10 {strides = array<i32>} : memref<1x10x24x128xbf16, #tpu.memory_space<vmem>>, vector<1x8x1x128xbf16>,
    %c0_19 = arith.constant 0 : index
    %c1_20 = arith.constant 1 : index
    %c16 = arith.constant 16 : index
    %c0_21 = arith.constant 0 : index
    %14 = vector.load %arg11[%c0_19, %c1_20, %c16, %c0_21] : memref<1x10x24x128xbf16, #tpu.memory_space<vmem>>, vector<1x8x1x128xbf16>
    tpu.vector_store %arg11[%c0_19, %c1_20, %c16, %c0_21], %10 {strides = array<i32>} : memref<1x10x24x128xbf16, #tpu.memory_space<vmem>>, vector<1x8x1x128xbf16>,
    %15 = arith.truncf %8 : vector<64x128xf32> to vector<64x128xbf16>
    %16 = vector.shape_cast %15 : vector<64x128xbf16> to vector<1x8x8x128xbf16>
    %c0_22 = arith.constant 0 : index
    %c1_23 = arith.constant 1 : index
    %c8 = arith.constant 8 : index
    %c0_24 = arith.constant 0 : index
    %17 = vector.load %arg11[%c0_22, %c1_23, %c8, %c0_24] : memref<1x10x24x128xbf16, #tpu.memory_space<vmem>>, vector<1x8x8x128xbf16>
    tpu.vector_store %arg11[%c0_22, %c1_23, %c8, %c0_24], %16 {strides = array<i32>} : memref<1x10x24x128xbf16, #tpu.memory_space<vmem>>, vector<1x8x8x128xbf16>,
    %c0_25 = arith.constant 0 : index
    %c0_26 = arith.constant 0 : index
    %c7_27 = arith.constant 7 : index
    %c0_28 = arith.constant 0 : index
    %18 = vector.load %arg11[%c0_25, %c0_26, %c7_27, %c0_28] : memref<1x10x24x128xbf16, #tpu.memory_space<vmem>>, vector<1x8x8x128xbf16>
    %c0_29 = arith.constant 0 : index
    %c0_30 = arith.constant 0 : index
    %c8_31 = arith.constant 8 : index
    %c0_32 = arith.constant 0 : index
    %19 = vector.load %arg11[%c0_29, %c0_30, %c8_31, %c0_32] : memref<1x10x24x128xbf16, #tpu.memory_space<vmem>>, vector<1x8x8x128xbf16>
    %c0_33 = arith.constant 0 : index
    %c0_34 = arith.constant 0 : index
    %c9_35 = arith.constant 9 : index
    %c0_36 = arith.constant 0 : index
    %20 = vector.load %arg11[%c0_33, %c0_34, %c9_35, %c0_36] : memref<1x10x24x128xbf16, #tpu.memory_space<vmem>>, vector<1x8x8x128xbf16>
    %c0_37 = arith.constant 0 : index
    %c1_38 = arith.constant 1 : index
    %c7_39 = arith.constant 7 : index
    %c0_40 = arith.constant 0 : index
    %21 = vector.load %arg11[%c0_37, %c1_38, %c7_39, %c0_40] : memref<1x10x24x128xbf16, #tpu.memory_space<vmem>>, vector<1x8x8x128xbf16>
    %c0_41 = arith.constant 0 : index
    %c1_42 = arith.constant 1 : index
    %c8_43 = arith.constant 8 : index
    %c0_44 = arith.constant 0 : index
    %22 = vector.load %arg11[%c0_41, %c1_42, %c8_43, %c0_44] : memref<1x10x24x128xbf16, #tpu.memory_space<vmem>>, vector<1x8x8x128xbf16>
    %c0_45 = arith.constant 0 : index
    %c1_46 = arith.constant 1 : index
    %c9_47 = arith.constant 9 : index
    %c0_48 = arith.constant 0 : index
    %23 = vector.load %arg11[%c0_45, %c1_46, %c9_47, %c0_48] : memref<1x10x24x128xbf16, #tpu.memory_space<vmem>>, vector<1x8x8x128xbf16>
    %c0_49 = arith.constant 0 : index
    %c2 = arith.constant 2 : index
    %c7_50 = arith.constant 7 : index
    %c0_51 = arith.constant 0 : index
    %24 = vector.load %arg11[%c0_49, %c2, %c7_50, %c0_51] : memref<1x10x24x128xbf16, #tpu.memory_space<vmem>>, vector<1x8x8x128xbf16>
    %c0_52 = arith.constant 0 : index
    %c2_53 = arith.constant 2 : index
    %c8_54 = arith.constant 8 : index
    %c0_55 = arith.constant 0 : index
    %25 = vector.load %arg11[%c0_52, %c2_53, %c8_54, %c0_55] : memref<1x10x24x128xbf16, #tpu.memory_space<vmem>>, vector<1x8x8x128xbf16>
    %c0_56 = arith.constant 0 : index
    %c2_57 = arith.constant 2 : index
    %c9_58 = arith.constant 9 : index
    %c0_59 = arith.constant 0 : index
    %26 = vector.load %arg11[%c0_56, %c2_57, %c9_58, %c0_59] : memref<1x10x24x128xbf16, #tpu.memory_space<vmem>>, vector<1x8x8x128xbf16>
    %27 = tpu.concatenate %18, %19, %20, %21, %22, %23, %24, %25, %26 in 3 : vector<1x8x8x128xbf16>, vector<1x8x8x128xbf16>, vector<1x8x8x128xbf16>, vector<1x8x8x128xbf16>, vector<1x8x8x128xbf16>, vector<1x8x8x128xbf16>, vector<1x8x8x128xbf16>, vector<1x8x8x128xbf16>, vector<1x8x8x128xbf16> -> vector<1x8x8x1152xbf16>
    %28 = vector.shape_cast %27 : vector<1x8x8x1152xbf16> to vector<64x1152xbf16>
    %c0_60 = arith.constant 0 : index
    %c0_61 = arith.constant 0 : index
    %29 = vector.load %arg4[%c0_60, %c0_61] : memref<1152x128xbf16, #tpu.memory_space<vmem>>, vector<1152x128xbf16>
    %cst_62 = arith.constant dense<0.000000e+00> : vector<64x128xf32>
    %30 = tpu.matmul %28, %29, %cst_62 {dimension_numbers = #tpu.dot_dimension_numbers<[1], [0], [0], [1], [0, 0, 1, 1], [], []>} : vector<64x1152xbf16>, vector<1152x128xbf16>, vector<64x128xf32> -> vector<64x128xf32>
    %c0_63 = arith.constant 0 : index
    %c0_64 = arith.constant 0 : index
    %31 = vector.load %arg5[%c0_63, %c0_64] : memref<1x128xf32, #tpu.memory_space<vmem>>, vector<1x128xf32>
    %32 = vector.broadcast %31 : vector<1x128xf32> to vector<64x128xf32>
    %33 = arith.addf %30, %32 : vector<64x128xf32>
    %cst_65 = arith.constant 0.000000e+00 : f32
    %34 = vector.broadcast %cst_65 : f32 to vector<64x128xf32>
    %35 = arith.maximumf %33, %34 : vector<64x128xf32>
    %36 = arith.truncf %35 : vector<64x128xf32> to vector<64x128xbf16>
    %c0_66 = arith.constant 0 : index
    %c0_67 = arith.constant 0 : index
    %37 = vector.load %arg6[%c0_66, %c0_67] : memref<128x128xbf16, #tpu.memory_space<vmem>>, vector<128x128xbf16>
    %cst_68 = arith.constant dense<0.000000e+00> : vector<64x128xf32>
    %38 = tpu.matmul %36, %37, %cst_68 {dimension_numbers = #tpu.dot_dimension_numbers<[1], [0], [0], [1], [0, 0, 1, 1], [], []>} : vector<64x128xbf16>, vector<128x128xbf16>, vector<64x128xf32> -> vector<64x128xf32>
    %c0_69 = arith.constant 0 : index
    %c0_70 = arith.constant 0 : index
    %39 = vector.load %arg7[%c0_69, %c0_70] : memref<1x128xf32, #tpu.memory_space<vmem>>, vector<1x128xf32>
    %40 = vector.broadcast %39 : vector<1x128xf32> to vector<64x128xf32>
    %41 = arith.addf %38, %40 : vector<64x128xf32>
    %c0_71 = arith.constant 0 : index
    %c0_72 = arith.constant 0 : index
    %42 = vector.load %arg8[%c0_71, %c0_72] : memref<128x128xbf16, #tpu.memory_space<vmem>>, vector<128x128xbf16>
    %cst_73 = arith.constant dense<0.000000e+00> : vector<64x128xf32>
    %43 = tpu.matmul %1, %42, %cst_73 {dimension_numbers = #tpu.dot_dimension_numbers<[1], [0], [0], [1], [0, 0, 1, 1], [], []>} : vector<64x128xbf16>, vector<128x128xbf16>, vector<64x128xf32> -> vector<64x128xf32>
    %c0_74 = arith.constant 0 : index
    %c0_75 = arith.constant 0 : index
    %44 = vector.load %arg9[%c0_74, %c0_75] : memref<1x128xf32, #tpu.memory_space<vmem>>, vector<1x128xf32>
    %45 = vector.broadcast %44 : vector<1x128xf32> to vector<64x128xf32>
    %46 = arith.addf %43, %45 : vector<64x128xf32>
    %cst_76 = arith.constant 1.000000e+00 : f32
    %47 = vector.broadcast %cst_76 : f32 to vector<64x128xf32>
    %48 = arith.mulf %47, %46 : vector<64x128xf32>
    %49 = arith.addf %41, %48 : vector<64x128xf32>
    %cst_77 = arith.constant 0.000000e+00 : f32
    %50 = vector.broadcast %cst_77 : f32 to vector<64x128xf32>
    %51 = arith.maximumf %49, %50 : vector<64x128xf32>
    %52 = vector.shape_cast %51 : vector<64x128xf32> to vector<1x8x8x128xf32>
    %53 = arith.truncf %52 : vector<1x8x8x128xf32> to vector<1x8x8x128xbf16>
    %c0_78 = arith.constant 0 : index
    %c0_79 = arith.constant 0 : index
    %c0_80 = arith.constant 0 : index
    %c0_81 = arith.constant 0 : index
    %54 = vector.load %arg10[%c0_78, %c0_79, %c0_80, %c0_81] : memref<1x8x8x128xbf16, #tpu.memory_space<vmem>>, vector<1x8x8x128xbf16>
    tpu.vector_store %arg10[%c0_78, %c0_79, %c0_80, %c0_81], %53 {strides = array<i32>} : memref<1x8x8x128xbf16, #tpu.memory_space<vmem>>, vector<1x8x8x128xbf16>,
    return
  }
  func.func @transform_0(%arg0: i32) -> (i32, i32, i32, i32) {
    %c0_i32 = arith.constant 0 : i32
    %c0_i32_0 = arith.constant 0 : i32
    %c0_i32_1 = arith.constant 0 : i32
    %c0_i32_2 = arith.constant 0 : i32
    return %arg0, %c0_i32, %c0_i32_0, %c0_i32_1 : i32, i32, i32, i32
  }
  func.func @transform_1(%arg0: i32) -> (i32, i32) {
    %c0_i32 = arith.constant 0 : i32
    %c0_i32_0 = arith.constant 0 : i32
    %c0_i32_1 = arith.constant 0 : i32
    return %c0_i32, %c0_i32_0 : i32, i32
  }
  func.func @transform_2(%arg0: i32) -> (i32, i32) {
    %c0_i32 = arith.constant 0 : i32
    %c0_i32_0 = arith.constant 0 : i32
    %c0_i32_1 = arith.constant 0 : i32
    return %c0_i32, %c0_i32_0 : i32, i32
  }
  func.func @transform_3(%arg0: i32) -> (i32, i32) {
    %c0_i32 = arith.constant 0 : i32
    %c0_i32_0 = arith.constant 0 : i32
    %c0_i32_1 = arith.constant 0 : i32
    return %c0_i32, %c0_i32_0 : i32, i32
  }
  func.func @transform_4(%arg0: i32) -> (i32, i32) {
    %c0_i32 = arith.constant 0 : i32
    %c0_i32_0 = arith.constant 0 : i32
    %c0_i32_1 = arith.constant 0 : i32
    return %c0_i32, %c0_i32_0 : i32, i32
  }
  func.func @transform_5(%arg0: i32) -> (i32, i32) {
    %c0_i32 = arith.constant 0 : i32
    %c0_i32_0 = arith.constant 0 : i32
    %c0_i32_1 = arith.constant 0 : i32
    return %c0_i32, %c0_i32_0 : i32, i32
  }
  func.func @transform_6(%arg0: i32) -> (i32, i32) {
    %c0_i32 = arith.constant 0 : i32
    %c0_i32_0 = arith.constant 0 : i32
    %c0_i32_1 = arith.constant 0 : i32
    return %c0_i32, %c0_i32_0 : i32, i32
  }
  func.func @transform_7(%arg0: i32) -> (i32, i32) {
    %c0_i32 = arith.constant 0 : i32
    %c0_i32_0 = arith.constant 0 : i32
    %c0_i32_1 = arith.constant 0 : i32
    return %c0_i32, %c0_i32_0 : i32, i32
  }
  func.func @transform_8(%arg0: i32) -> (i32, i32) {
    %c0_i32 = arith.constant 0 : i32
    %c0_i32_0 = arith.constant 0 : i32
    %c0_i32_1 = arith.constant 0 : i32
    return %c0_i32, %c0_i32_0 : i32, i32
  }
  func.func @transform_9(%arg0: i32) -> (i32, i32, i32, i32) {
    %c0_i32 = arith.constant 0 : i32
    %c0_i32_0 = arith.constant 0 : i32
    %c0_i32_1 = arith.constant 0 : i32
    %c0_i32_2 = arith.constant 0 : i32
    return %arg0, %c0_i32, %c0_i32_0, %c0_i32_1 : i32, i32, i32, i32
  }
}

</mosaic_0001>

<bundles_post_ra>
// kernel: tpu_custom_call.1
= control target key start
LH: loop header
LB: loop body
LE: loop exit
PB: predicated region body
PF: predicated region fallthrough
CT: control target
= control target key end

     0   :  { %s5270_s0 = inlined_call_operand.hbm [shape: bf16[2,8,8,128], index: 0, kind: input, shape index: {}]   ;;  %s5271_s1 = inlined_call_operand.hbm [shape: bf16[128,128], index: 1, kind: input, shape index: {}]   ;;  %s5272_s2 = inlined_call_operand.vmem [shape: f32[1,128], index: 2, kind: input, shape index: {}]   ;;  %s5273_s3 = inlined_call_operand.hbm [shape: bf16[1152,128], index: 3, kind: input, shape index: {}]   ;;  %s5274_s4 = inlined_call_operand.vmem [shape: f32[1,128], index: 4, kind: input, shape index: {}]   ;;  %s5275_s5 = inlined_call_operand.hbm [shape: bf16[128,128], index: 5, kind: input, shape index: {}]   ;;  %s5276_s6 = inlined_call_operand.vmem [shape: f32[1,128], index: 6, kind: input, shape index: {}]   ;;  %s5277_s7 = inlined_call_operand.hbm [shape: bf16[128,128], index: 7, kind: input, shape index: {}]   ;;  %s5278_s8 = inlined_call_operand.vmem [shape: f32[1,128], index: 8, kind: input, shape index: {}]   ;;  %s5279_s9 = inlined_call_operand.hbm [shape: bf16[2,8,8,128], index: 9, kind: output, shape index: {}]  }
   0x1   :  { %5286 = sst [smem:[#allocation19_spill]] %s5279_s9 }
   0x2   :  { %14 = vsyncpa [#allocation4], 0 }
   0x3   :  { %16 = vsyncpa [#allocation4 + $0x1], 0 }
   0x4   :  { %17 = vsyncpa [#allocation7], 0 }
   0x5   :  { %18 = vsyncpa [#allocation10], 0 }
   0x6   :  { %19 = vsyncpa [#allocation5], 0 }
   0x7   :  { %21 = vsyncpa [#allocation5 + $0x1], 0  ;;  %s4593_s30 = smov 0   ;;  %s4595_s10 = smov 0  }
   0x8   :  { %s4597_s11 = smov 0   ;;  %s4599_s12 = smov 0  }
   0x9 LB: > { %5287 = sst [smem:[#allocation17_spill]] %s4518_s30  ;;  %s4614_s13 = sadd.s32 4294967295, %s4530_s12   ;;  %s4530_s12 = sphi %s4599_s12, %s5317_s12   ;;  %s4526_s11 = sphi %s4597_s11, %s5316_s11   ;;  %s4522_s10 = sphi %s4595_s10, %s5315_s10   ;;  %s4518_s30 = sphi %s4593_s30, %s5314_s30  }
   0xa   : > { %s3368_s14 = sadd.s32 4294967294, %s4530_s12   ;;  %p47_p0 = scmp.ne.s32.totalorder %s4522_s10, %s4518_s30 }
   0xb   : > { %p5280_p1 = scmp.eq.s32.totalorder %s4614_s13, 0  ;;  %p245_p3 = scmp.eq.s32.totalorder %s3368_s14, 1 }
   0xc   : > { %p3369_p5 = scmp.ge.s32.totalorder %s4530_s12, 1  ;;  %p252_p7 = scmp.lt.s32.totalorder %s4530_s12, 3 }
   0xd   : > { %p4623_p4 = por %p5280_p1, %p47_p0  ;;  %p4628_p6 = por %p245_p3, %p47_p0 }
   0xe   : > { %p4633_p8 = pnand %p3369_p5, %p252_p7  ;;  %s4532_s18 = smov [#allocation6]  }
   0xf   : > { %s5288_s15 = scalar_select %p4623_p4, 1, 0 }
  0x10   : > { %s5289_s16 = scalar_select %p4628_p6, 1, 0 }
  0x11   : > { %s5291_s17 = scalar_select %p4633_p8, 1, 0 }
  0x12   : > { %5290 = sst [smem:[#allocation18_spill]] %s5289_s16  ;;  %s264_s19 = sshll.u32 %s4532_s18, 4  ;;  %s4637_s19 = int_to_ptr.vmem [resolvable:$true] %s264_s19 }
  0x13   : > { %p4095_p9 = pneg %p4633_p8  ;;  %s4533_s21 = smov [#allocation9]  }
  0x14   : > { %s296_s22 = sshll.u32 %s4533_s21, 4  ;;  %s4534_s23 = smov [#allocation8]   ;;  %s4648_s22 = int_to_ptr.vmem [resolvable:$true] %s296_s22 }
  0x15   : > { %p4644_p11 = pnand %p4095_p9, %p5280_p1  ;;  %s4650_s24 = sshll.u32 %s4534_s23, 4  ;;  %s281_s24 = int_to_ptr.vmem [resolvable:$true] %s4650_s24 }
  0x16   : > { %s4314_s27 = scalar_lea.hbm %s5271_s1, 1024 }
  0x17   : > { %p4315_p12 = scmp.ne.s32.totalorder %s5271_s1, %s4314_s27  ;;  %p4660_p13 = pneg %p4644_p11 }
  0x18   : > { %p4321_p5 = scmp.lt.u32.totalorder %s4314_s27, %s5271_s1 }
  0x19   : > { %p4317_p0 = pnand %p4660_p13, %p4315_p12 }
  0x1b   : > { %p4318_p3 = pneg %p4317_p0 }
  0x1d   : > { %p4323_p7 = pnand %p4321_p5, %p4318_p3 }
  0x1f   : > { %4326 = shalt.err (!%p4323_p7)
}
  0x20   : > { %s4327_s23 = scalar_lea.vmem %s4637_s19, 1024  ;;  %p4335_p2 = scmp.lt.s32.totalorder %s4637_s19, %s4637_s19 }
  0x21   : > { %p4328_p9 = scmp.ne.s32.totalorder %s4637_s19, %s4327_s23  ;;  %p4336_p6 = scmp.lt.s32.totalorder %s4327_s23, %s4327_s23 }
  0x23   : > { %p4330_p10 = pnand %p4328_p9, %p4660_p13  ;;  %p4337_p12 = por %p4336_p6, %p4335_p2 }
  0x25   : > { %p4331_p1 = pneg %p4330_p10 }
  0x27   : > { %p4338_p0 = pnand %p4337_p12, %p4331_p1 }
  0x29   : > { %4341 = shalt.err (!%p4338_p0)
}
  0x2a   : > { %s4535_s25 = smov 64   ;;  %s4536_s26 = smov 4  }
  0x2b   : > { %4098 = dma.hbm_to_vmem [thread:$0]  (!%p4644_p11), %s5271_s1, 1024, %s4637_s19, [#allocation7], %s4535_s25, %s4535_s25, %s4536_s26  }
  0x2c   : > { %s4342_s21 = scalar_lea.hbm %s5275_s5, 1024 }
  0x2d   : > { %p4343_p1 = scmp.ne.s32.totalorder %s5275_s5, %s4342_s21  ;;  %p4349_p10 = scmp.lt.u32.totalorder %s4342_s21, %s5275_s5 }
  0x2f   : > { %p4345_p2 = pnand %p4343_p1, %p4660_p13 }
  0x31   : > { %p4346_p6 = pneg %p4345_p2 }
  0x33   : > { %p4351_p3 = pnand %p4349_p10, %p4346_p6 }
  0x35   : > { %4354 = shalt.err (!%p4351_p3)
}
  0x36   : > { %s4355_s19 = scalar_lea.vmem %s4648_s22, 1024  ;;  %p4363_p12 = scmp.lt.s32.totalorder %s4648_s22, %s4648_s22 }
  0x37   : > { %p4356_p5 = scmp.ne.s32.totalorder %s4648_s22, %s4355_s19  ;;  %p4364_p0 = scmp.lt.s32.totalorder %s4355_s19, %s4355_s19 }
  0x39   : > { %p4358_p7 = pnand %p4356_p5, %p4660_p13  ;;  %p4365_p1 = por %p4364_p0, %p4363_p12 }
  0x3b   : > { %p4359_p9 = pneg %p4358_p7 }
  0x3d   : > { %p4366_p2 = pnand %p4365_p1, %p4359_p9 }
  0x3f   : > { %4369 = shalt.err (!%p4366_p2)
}
  0x40   : > { %4104 = dma.hbm_to_vmem [thread:$0]  (!%p4644_p11), %s5275_s5, 1024, %s4648_s22, [#allocation10], %s4535_s25, %s4535_s25, %s4536_s26  }
  0x41   : > { %s4370_s28 = scalar_lea.hbm %s5273_s3, 9216 }
  0x42   : > { %p4371_p6 = scmp.ne.s32.totalorder %s5273_s3, %s4370_s28  ;;  %p4377_p5 = scmp.lt.u32.totalorder %s4370_s28, %s5273_s3 }
  0x44   : > { %p4373_p10 = pnand %p4371_p6, %p4660_p13 }
  0x46   : > { %p4374_p3 = pneg %p4373_p10 }
  0x48   : > { %p4379_p7 = pnand %p4377_p5, %p4374_p3 }
  0x4a   : > { %4382 = shalt.err (!%p4379_p7)
}
  0x4b   : > { %s4383_s19 = scalar_lea.vmem %s281_s24, 9216  ;;  %p4391_p1 = scmp.lt.s32.totalorder %s281_s24, %s281_s24 }
  0x4c   : > { %p4384_p9 = scmp.ne.s32.totalorder %s281_s24, %s4383_s19  ;;  %p4392_p2 = scmp.lt.s32.totalorder %s4383_s19, %s4383_s19 }
  0x4e   : > { %p4386_p12 = pnand %p4384_p9, %p4660_p13  ;;  %p4393_p4 = por %p4392_p2, %p4391_p1 }
  0x50   : > { %p4387_p0 = pneg %p4386_p12 }
  0x52   : > { %p4394_p8 = pnand %p4393_p4, %p4387_p0 }
  0x54   : > { %4397 = shalt.err (!%p4394_p8)
}
  0x55   : > { %4101 = dma.hbm_to_vmem [thread:$0]  (!%p4644_p11), %s5273_s3, 9216, %s281_s24, [#allocation7], %s4535_s25, %s4535_s25, %s4536_s26  }
  0x56   : > { %s4537_s30 = smov [#allocation11]   ;;  %s4398_s29 = scalar_lea.hbm %s5277_s7, 1024 }
  0x57   : > { %s312_s16 = sshll.u32 %s4537_s30, 4  ;;  %p4399_p4 = scmp.ne.s32.totalorder %s5277_s7, %s4398_s29  ;;  %s313_s16 = int_to_ptr.vmem [resolvable:$true] %s312_s16 }
  0x58   : > { %p4405_p10 = scmp.lt.u32.totalorder %s4398_s29, %s5277_s7 }
  0x59   : > { %p4401_p8 = pnand %p4399_p4, %p4660_p13 }
  0x5b   : > { %p4402_p6 = pneg %p4401_p8 }
  0x5d   : > { %p4407_p3 = pnand %p4405_p10, %p4402_p6 }
  0x5f   : > { %4410 = shalt.err (!%p4407_p3)
}
  0x60   : > { %s4411_s24 = scalar_lea.vmem %s313_s16, 1024  ;;  %p4419_p12 = scmp.lt.s32.totalorder %s313_s16, %s313_s16 }
  0x61   : > { %p4412_p5 = scmp.ne.s32.totalorder %s313_s16, %s4411_s24  ;;  %p4420_p0 = scmp.lt.s32.totalorder %s4411_s24, %s4411_s24 }
  0x63   : > { %p4414_p7 = pnand %p4412_p5, %p4660_p13  ;;  %p4421_p1 = por %p4420_p0, %p4419_p12 }
  0x65   : > { %p4415_p9 = pneg %p4414_p7 }
  0x67   : > { %p4422_p2 = pnand %p4421_p1, %p4415_p9 }
  0x69   : > { %4425 = shalt.err (!%p4422_p2)
}
  0x6a   : > { %4107 = dma.hbm_to_vmem [thread:$0]  (!%p4644_p11), %s5277_s7, 1024, %s313_s16, [#allocation10], %s4535_s25, %s4535_s25, %s4536_s26  }
  0x6b   : > { %s4754_s14 = sadd.s32 1, %s4530_s12   ;;  %s34_s20 = sadd.s32 1, %s4526_s11 }
  0x6c   : > { %s31_s30 = ssub.s32 %s4530_s12, %s4754_s14  ;;  %p41_p13 = scmp.ne.s32.totalorder %s4526_s11, %s4522_s10 }
  0x6d   : > { %p32_p4 = scmp.eq.s32.totalorder %s31_s30, 0  ;;  %p42_p8 = scmp.eq.s32.totalorder %s4530_s12, 0 }
  0x6e   : > { %p5294_p6 = scmp.eq.s32.totalorder %s4614_s13, 1  ;;  %p4120_p3 = scmp.lt.s32.totalorder %s4530_s12, 2 }
  0x6f   : > { %s4770_s28 = scalar_select %p32_p4, %s4526_s11, %s34_s20  }
  0x70   : > { %p4764_p10 = por %p5294_p6, %p41_p13  ;;  %p43_p5 = por %p42_p8, %p41_p13 }
  0x71   : > { %s329_s29 = sand.u32 1, %s4526_s11   ;;  %s3714_s16 = sshll.u32 %s4530_s12, 9 }
  0x72   : > { %s3375_s18 = sshll.u32 %s329_s29, 5  ;;  %s4777_s19 = scalar_lea.hbm %s5270_s0, %s3714_s16 }
  0x73   : > { %s333_s24 = scalar_lea.vmem [#allocation3], %s3375_s18  ;;  %p4781_p11 = pnand %p4120_p3, %p43_p5 }
  0x74   : > { %s340_s22 = sshll.u32 %s333_s24, 4  ;;  %s4785_s20 = scalar_lea.sflag [#allocation4], %s329_s29  ;;  %s4779_s22 = int_to_ptr.vmem [resolvable:$true] %s340_s22 }
  0x75   : > { %s4426_s30 = scalar_lea.hbm %s4777_s19, 512  ;;  %p4428_p9 = pneg %p4781_p11 }
  0x76   : > { %p4427_p7 = scmp.ne.s32.totalorder %s4777_s19, %s4426_s30  ;;  %s4431_s21 = scalar_lea.hbm %s5270_s0, 1024 }
  0x77   : > { %p4432_p1 = scmp.lt.u32.totalorder %s4777_s19, %s5270_s0  ;;  %p4433_p2 = scmp.lt.u32.totalorder %s4431_s21, %s4426_s30 }
  0x78   : > { %p4429_p12 = pnand %p4428_p9, %p4427_p7  ;;  %p4435_p4 = scmp.lt.u32.totalorder %s4426_s30, %s4777_s19 }
  0x79   : > { %p4434_p13 = por %p4433_p2, %p4432_p1 }
  0x7a   : > { %p4430_p0 = pneg %p4429_p12 }
  0x7b   : > { %p4436_p8 = por %p4435_p4, %p4434_p13 }
  0x7d   : > { %p4437_p6 = pnand %p4436_p8, %p4430_p0 }
  0x7f   : > { %4440 = shalt.err (!%p4437_p6)
}
  0x80   : > { %s4441_s29 = scalar_lea.vmem %s4779_s22, 512  ;;  %s4538_s18 = smov [#allocation3]  }
  0x81   : > { %p4442_p3 = scmp.ne.s32.totalorder %s4779_s22, %s4441_s29  ;;  %s4446_s16 = sshll.u32 %s4538_s18, 4  ;;  %s4447_s16 = int_to_ptr.vmem [resolvable:$false] %s4446_s16 }
  0x82   : > { %s4448_s23 = scalar_lea.vmem %s4447_s16, 1024  ;;  %p4449_p12 = scmp.lt.s32.totalorder %s4779_s22, %s4447_s16 }
  0x83   : > { %p4444_p5 = pnand %p4442_p3, %p4428_p9  ;;  %p4450_p1 = scmp.lt.s32.totalorder %s4448_s23, %s4441_s29 }
  0x85   : > { %p4445_p7 = pneg %p4444_p5  ;;  %p4451_p2 = por %p4450_p1, %p4449_p12 }
  0x87   : > { %p4452_p13 = pnand %p4451_p2, %p4445_p7 }
  0x89   : > { %4455 = shalt.err (!%p4452_p13)
}
  0x8a   : > { %4111 = dma.hbm_to_vmem [thread:$0]  (!%p4781_p11), %s4777_s19, 512, %s4779_s22, %s4785_s20, %s4535_s25, %s4535_s25, %s4536_s26  }
  0x8b   : > { %p5297_p9 = scmp.ne.s32.totalorder %s5291_s17, 0 }
  0x8c   : > { %s4819_s30 = sand.u32 (!%p5297_p9), 1, %s4522_s10   ;;  %p5298_p0 = scmp.ne.s32.totalorder (!%p5297_p9), %s5288_s15, 0 }
  0x8d   : > { %352 = sbr.rel (%p5297_p9) target bundleno = 1050 (0x41a), region = 56  ;;  %s3379_s21 = sshll.u32 (!%p5297_p9), %s4819_s30, 5 }
  0x8e   : > { %s355_s24 = scalar_lea.sflag (!%p5297_p9), [#allocation4], %s4819_s30  ;;  %s4825_s9 = scalar_lea.vmem (!%p5297_p9), [#allocation3], %s3379_s21 }
  0x94   : > { %4501 = dma.done.wait (%p5298_p0), %s355_s24, 512  }
  0x95   : > { %4503 = vsyncadd (%p5298_p0), %s355_s24, 4294966784  ;;  %p5299_p11 = scmp.eq.s32.totalorder %s4614_s13, 0 }
  0x97   : > { %4505 = dma.done.wait (%p5299_p11), [#allocation7], 10240   ;;  %p5300_p4 = pmov %p5299_p11 }
  0x99   : > { %4507 = vsyncadd (%p5300_p4), [#allocation7], 4294957056  ;;  %p5301_p8 = pmov %p5300_p4 }
  0x9a   : > { %p5302_p6 = pmov %p5300_p4 }
  0x9b   : > { %4509 = dma.done.wait (%p5301_p8), [#allocation10], 2048  }
  0x9c   : > { %4511 = vsyncadd (%p5302_p6), [#allocation10], 4294965248  ;;  %v4167_v0 = vld [vmem:[#allocation6] sm:$0xff]   ;;  %v4168_v1 = vld [vmem:[#allocation6 + $0x8] sm:$0xff]   ;;  %vm593_vm0 = vcmask 1040384   ;;  %v4539_v20 = vmov 0  }
  0x9d   : > { %3955 = vmatprep.subr.bf16.mxu1 %v4167_v0  ;;  %v4169_v2 = vld [vmem:[#allocation6 + $0x10] sm:$0xff]   ;;  %v4170_v3 = vld [vmem:[#allocation6 + $0x18] sm:$0xff]   ;;  %v4175_v4 = vld [vmem:[%s4825_s9] sm:$0xff]   ;;  %vm594_vm1 = vsmask.f32 256  ;;  %vm586_vm3 = vcmask 1043459  }
  0x9e   : > { %3956 = vmatpush3.bf16.msra.mxu1 %v4167_v0  ;;  %3971 = vmatprep.mubr.bf16.mxu1 %v4175_v4  ;;  %v4171_v5 = vld [vmem:[#allocation6 + $0x20] sm:$0xff]   ;;  %v4172_v6 = vld [vmem:[#allocation6 + $0x28] sm:$0xff]   ;;  %v4173_v7 = vld [vmem:[#allocation6 + $0x30] sm:$0xff]   ;;  %592 = vst [vmem:[#allocation2 + $0x4] sm:$0xf] %v4539_v20  ;;  %vm3459_vm6 = vcmask 1043456 }
  0x9f   : > { %3957 = vmatprep.subr.bf16.mxu1 %v4168_v1  ;;  %v4174_v8 = vld [vmem:[#allocation6 + $0x38] sm:$0xff]   ;;  %v4176_v9 = vld [vmem:[%s4825_s9 + $0x8] sm:$0xff]   ;;  %v4177_v10 = vld [vmem:[%s4825_s9 + $0x10] sm:$0xff]   ;;  %603 = vst [vmem:[#allocation2 + $0x70] sm:$0xf] %v4539_v20  ;;  %s408_s18 = scalar_lea.vmem [#allocation12], %s3379_s21 }
  0xa0   : > { %v4178_v11 = vld [vmem:[%s4825_s9 + $0x18] sm:$0xff]   ;;  %v4180_v12 = vld [vmem:[#allocation8 + $0xc0] sm:$0xff]   ;;  %vm4844_vm2 = vmand %vm593_vm0, %vm594_vm1  ;;  %vm587_vm4 = vsmask.f32 7950  ;;  %vm1353_vm7 = vsmask.f32 4368 }
  0xa1   : > { %v4179_v13 = vld [vmem:[#allocation8 + $0x40] sm:$0xff]   ;;  %3799 = vmatprep.subr.bf16.mxu0 %v4180_v12  ;;  %v596_v17 = vld [vmem:[#allocation2 + $0x8] sm:$0x1]  ;;  %v4184_v19 = vld [vmem:[#allocation8 + $0xc8] sm:$0xff]   ;;  %s3257_s16 = sshll.u32 %s408_s18, 4  ;;  %s3723_s23 = sshll.u32 %s4614_s13, 9  ;;  %s5221_s16 = int_to_ptr.vmem [resolvable:$true] %s3257_s16 }
  0xa2   : > { %3958 = vmatpush3.bf16.msra.mxu1 %v4168_v1  ;;  %v4182_v14 = vld [vmem:[#allocation8 + $0x80] sm:$0xff]   ;;  %v597_v18 = vsel %vm4844_vm2, 0, %v596_v17  ;;  %v4183_v21 = vld [vmem:[#allocation8 + $0x48] sm:$0xff]   ;;  %v632_v24 = vld [vmem:[#allocation2 + $0x14] sm:$0x1]  ;;  %s3244_s17 = scalar_lea.sflag [#allocation5], %s4819_s30 }
  0xa3   : > { %3959 = vmatprep.subr.bf16.mxu1 %v4169_v2  ;;  %v4181_v15 = vld [vmem:[#allocation8] sm:$0xff]   ;;  %3800 = vmatpush3.bf16.msra.mxu0 %v4182_v14  ;;  %598 = vst [vmem:[#allocation2 + $0x8] sm:$0x1] %v597_v18  ;;  %v4186_v22 = vld [vmem:[#allocation8 + $0x88] sm:$0xff]   ;;  %v638_v25 = vld [vmem:[#allocation2 + $0x2c] sm:$0x1] }
  0xa4   : > { %3801 = vmatprep.subr.bf16.mxu0 %v4184_v19  ;;  %v4185_v23 = vld [vmem:[#allocation8 + $0x8] sm:$0xff]   ;;  %v633_v26 = vsel %vm4844_vm2, 0, %v632_v24  ;;  %v639_v27 = vsel %vm4844_vm2, 0, %v638_v25  ;;  %v4188_v28 = vld [vmem:[#allocation8 + $0xd0] sm:$0xff]   ;;  %vm4854_vm5 = vmand %vm586_vm3, %vm587_vm4  ;;  %s4456_s13 = scalar_lea.vmem %s5221_s16, 512  ;;  %s4540_s25 = smov [#allocation12]  }
  0xa5   : > { %634 = vst [vmem:[#allocation2 + $0x14] sm:$0x1] %v633_v26  ;;  %640 = vst [vmem:[#allocation2 + $0x2c] sm:$0x1] %v639_v27  ;;  %v4187_v29 = vld [vmem:[#allocation8 + $0x50] sm:$0xff]   ;;  %v4192_v37 = vld [vmem:[#allocation8 + $0xd8] sm:$0xff]   ;;  %p4457_p3 = scmp.ne.s32.totalorder %s5221_s16, %s4456_s13 }
  0xa6   : > { %3960 = vmatpush3.bf16.msra.mxu1 %v4169_v2  ;;  %v4190_v30 = vld [vmem:[#allocation8 + $0x90] sm:$0xff]   ;;  %v611_v34 = vld [vmem:[#allocation2 + $0x18] sm:$0x8]  ;;  %v617_v38 = vld [vmem:[#allocation2 + $0x30] sm:$0x8]  ;;  %s4460_s26 = sshll.u32 %s4540_s25, 4  ;;  %s4461_s26 = int_to_ptr.vmem [resolvable:$false] %s4460_s26 }
  0xa7   : > { %3961 = vmatprep.subr.bf16.mxu1 %v4170_v3  ;;  %3802 = vmatpush3.bf16.msra.mxu0 %v4186_v22  ;;  %v4189_v32 = vld [vmem:[#allocation8 + $0x10] sm:$0xff]   ;;  %v612_v36 = vsel %vm4854_vm5, 0, %v611_v34  ;;  %v635_v39 = vld [vmem:[#allocation2 + $0x20] sm:$0x1]  ;;  %v4191_v40 = vld [vmem:[#allocation8 + $0x58] sm:$0xff]   ;;  %v618_v43 = vsel %vm4854_vm5, 0, %v617_v38  ;;  %p4458_p5 = pnand %p4457_p3, %p4764_p10  ;;  %p4463_p12 = scmp.lt.s32.totalorder %s5221_s16, %s4461_s26 }
  0xa8   : > { %3803 = vmatprep.subr.bf16.mxu0 %v4188_v28  ;;  %v608_v33 = vld [vmem:[#allocation2 + $0xc] sm:$0x8]  ;;  %613 = vst [vmem:[#allocation2 + $0x18] sm:$0x8] %v612_v36  ;;  %v4194_v41 = vld [vmem:[#allocation8 + $0x98] sm:$0xff]   ;;  %v636_v44 = vsel %vm4844_vm2, 0, %v635_v39  ;;  %vm4907_vm8 = vmor %vm594_vm1, %vm1353_vm7 }
  0xa9   : > { %v609_v35 = vsel %vm4854_vm5, 0, %v608_v33  ;;  %v614_v42 = vld [vmem:[#allocation2 + $0x24] sm:$0x8]  ;;  %v4193_v45 = vld [vmem:[#allocation8 + $0x18] sm:$0xff]   ;;  %619 = vst [vmem:[#allocation2 + $0x30] sm:$0x8] %v618_v43  ;;  %p4459_p7 = pneg %p4458_p5 }
  0xaa   : > { %3962 = vmatpush3.bf16.msra.mxu1 %v4170_v3  ;;  %610 = vst [vmem:[#allocation2 + $0xc] sm:$0x8] %v609_v35  ;;  %v615_v46 = vsel %vm4854_vm5, 0, %v614_v42  ;;  %637 = vst [vmem:[#allocation2 + $0x20] sm:$0x1] %v636_v44  ;;  %v4196_v47 = vld [vmem:[#allocation8 + $0xe0] sm:$0xff]  }
  0xab   : > { %3963 = vmatprep.subr.bf16.mxu1 %v4171_v5  ;;  %3804 = vmatpush3.bf16.msra.mxu0 %v4190_v30  ;;  %616 = vst [vmem:[#allocation2 + $0x24] sm:$0x8] %v615_v46  ;;  %v589_v48 = vld [vmem:[#allocation2] sm:$0x8]  ;;  %v4195_v49 = vld [vmem:[#allocation8 + $0x60] sm:$0xff]   ;;  %v4204_v57 = vld [vmem:[#allocation8 + $0xf0] sm:$0xff]  }
  0xac   : > { %3805 = vmatprep.subr.bf16.mxu0 %v4192_v37  ;;  %v4198_v50 = vld [vmem:[#allocation8 + $0xa0] sm:$0xff]   ;;  %v590_v51 = vsel %vm4854_vm5, 0, %v589_v48  ;;  %v4199_v53 = vld [vmem:[#allocation8 + $0x68] sm:$0xff]   ;;  %v4203_v58 = vld [vmem:[#allocation8 + $0x70] sm:$0xff]   ;;  %s4462_s19 = scalar_lea.vmem %s4461_s26, 1024 }
  0xad   : > { %v4197_v52 = vld [vmem:[#allocation8 + $0x20] sm:$0xff]   ;;  %v4200_v54 = vld [vmem:[#allocation8 + $0xe8] sm:$0xff]   ;;  %591 = vst [vmem:[#allocation2] sm:$0x8] %v590_v51  ;;  %v4206_v59 = vld [vmem:[#allocation8 + $0xb0] sm:$0xff]   ;;  %p4464_p1 = scmp.lt.s32.totalorder %s4462_s19, %s4456_s13 }
  0xae   : > { %3964 = vmatpush3.bf16.msra.mxu1 %v4171_v5  ;;  %v4202_v55 = vld [vmem:[#allocation8 + $0xa8] sm:$0xff]   ;;  %v4205_v60 = vld [vmem:[#allocation8 + $0x30] sm:$0xff]   ;;  %v4208_v61 = vld [vmem:[#allocation8 + $0xf8] sm:$0xff]  }
  0xaf   : > { %3965 = vmatprep.subr.bf16.mxu1 %v4172_v6  ;;  %3806 = vmatpush3.bf16.msra.mxu0 %v4194_v41  ;;  %v4201_v56 = vld [vmem:[#allocation8 + $0x28] sm:$0xff]   ;;  %v4207_v62 = vld [vmem:[#allocation8 + $0x78] sm:$0xff]   ;;  %v620_v63 = vld [vmem:[#allocation2 + $0x3c] sm:$0x8]  ;;  %p4465_p2 = por %p4464_p1, %p4463_p12 }
  0xb0   : > { %3807 = vmatprep.subr.bf16.mxu0 %v4196_v47  ;;  %v641_v0 = vld [vmem:[#allocation2 + $0x38] sm:$0x1]  ;;  %v4210_v1 = vld [vmem:[#allocation8 + $0xb8] sm:$0xff]   ;;  %v621_v2 = vsel %vm4854_vm5, 0, %v620_v63  ;;  %v644_v5 = vld [vmem:[#allocation2 + $0x44] sm:$0x1] }
  0xb1   : > { %v642_v3 = vsel %vm4844_vm2, 0, %v641_v0  ;;  %v4209_v4 = vld [vmem:[#allocation8 + $0x38] sm:$0xff]   ;;  %622 = vst [vmem:[#allocation2 + $0x3c] sm:$0x8] %v621_v2  ;;  %v629_v18 = vld [vmem:[#allocation2 + $0x60] sm:$0x8]  ;;  %p4466_p13 = pnand %p4465_p2, %p4459_p7 }
  0xb2   : > { %3966 = vmatpush3.bf16.msra.mxu1 %v4172_v6  ;;  %643 = vst [vmem:[#allocation2 + $0x38] sm:$0x1] %v642_v3  ;;  %v645_v6 = vsel %vm4844_vm2, 0, %v644_v5  ;;  %v647_v12 = vld [vmem:[#allocation2 + $0x50] sm:$0x1]  ;;  %v630_v19 = vsel %vm4854_vm5, 0, %v629_v18 }
  0xb3   : > { %3967 = vmatprep.subr.bf16.mxu1 %v4173_v7  ;;  %3808 = vmatpush3.bf16.msra.mxu0 %v4198_v50  ;;  %646 = vst [vmem:[#allocation2 + $0x44] sm:$0x1] %v645_v6  ;;  %v648_v14 = vsel %vm4844_vm2, 0, %v647_v12  ;;  %631 = vst [vmem:[#allocation2 + $0x60] sm:$0x8] %v630_v19 }
  0xb4   : > { %3809 = vmatprep.subr.bf16.mxu0 %v4200_v54  ;;  %649 = vst [vmem:[#allocation2 + $0x50] sm:$0x1] %v648_v14  ;;  %v697_v20 = vld [vmem:[#allocation2 + $0x4] sm:$0xf]  ;;  %v600_v22 = vld [vmem:[#allocation2 + $0x6c] sm:$0x8] }
  0xb5   : > { %v653_v24 = vld [vmem:[#allocation2 + $0x68] sm:$0x1]  ;;  %v760_v26 = vld [vmem:[#allocation2 + $0x70] sm:$0xf]  ;;  %v696_v38 = vld [vmem:[#allocation2] sm:$0x8] }
  0xb6   : > { %3968 = vmatpush3.bf16.msra.mxu1 %v4173_v7  ;;  %v4218_v7 = vld [vmem:[#allocation8 + $0x1c0] sm:$0xff]   ;;  %v654_v25 = vsel %vm4844_vm2, 0, %v653_v24  ;;  %v712_v36 = vld [vmem:[#allocation2 + $0x8] sm:$0x1]  ;;  %v3385_v39 = vld [vmem:[%s5272_s2] ss:$0 sm:$0xff] }
  0xb7   : > { %3969 = vmatprep.subr.bf16.mxu1 %v4174_v8  ;;  %3810 = vmatpush3.bf16.msra.mxu0 %v4202_v55  ;;  %655 = vst [vmem:[#allocation2 + $0x68] sm:$0x1] %v654_v25  ;;  %v720_v47 = vld [vmem:[#allocation2 + $0xc] sm:$0x8]  ;;  %v604_v19 = vld [vmem:[#allocation2 + $0x74] sm:$0x1] }
  0xb8   : > { %3811 = vmatprep.subr.bf16.mxu0 %v4204_v57 }
  0xba   : > { %3970 = vmatpush3.bf16.msra.mxu1 %v4174_v8  ;;  %v4217_v8 = vld [vmem:[#allocation8 + $0x140] sm:$0xff]  }
  0xbb   : > { %3759 = vmatprep.subr.bf16.mxu1 %v4179_v13  ;;  %3812 = vmatpush3.bf16.msra.mxu0 %v4206_v59 }
  0xbc   : > { %3813 = vmatprep.subr.bf16.mxu0 %v4208_v61 }
  0xbd   : > { %3972 = vmatmul.mubr.bf16.vlgmr.msra.gmra.mrb[0].mxu1 %v4176_v9  ;;  %v623_v9 = vld [vmem:[#allocation2 + $0x48] sm:$0x8] }
  0xbe   : > { %3975 = vmatprep.mubr.bf16.mxu1 %v4177_v10  ;;  %3760 = vmatpush3.bf16.msra.mxu1 %v4181_v15  ;;  %v624_v10 = vsel %vm4854_vm5, 0, %v623_v9  ;;  %v626_v15 = vld [vmem:[#allocation2 + $0x54] sm:$0x8] }
  0xbf   : > { %3761 = vmatprep.subr.bf16.mxu1 %v4183_v21  ;;  %3814 = vmatpush3.bf16.msra.mxu0 %v4210_v1  ;;  %625 = vst [vmem:[#allocation2 + $0x48] sm:$0x8] %v624_v10  ;;  %v627_v17 = vsel %vm4854_vm5, 0, %v626_v15  ;;  %v3406_v21 = vcombine.low %v697_v20, %v697_v20 }
  0xc0   : > { %3879 = vmatprep.subr.bf16.mxu0 %v4218_v7  ;;  %628 = vst [vmem:[#allocation2 + $0x54] sm:$0x8] %v627_v17 }
  0xc1   : > { %v810_v27 = vshrl.u32 %v3406_v21, 16  ;;  %v813_v28 = vshll.u32 %v3406_v21, 16 }
  0xc2   : > { %3762 = vmatpush3.bf16.msra.mxu1 %v4185_v23  ;;  %v601_v23 = vsel %vm4854_vm5, 0, %v600_v22 }
  0xc3   : > { %3763 = vmatprep.subr.bf16.mxu1 %v4187_v29  ;;  %602 = vst [vmem:[#allocation2 + $0x6c] sm:$0x8] %v601_v23  ;;  %v3445_v29 = vcombine.low %v760_v26, %v760_v26  ;;  %v812_v30 = vrot.slane %v810_v27, 4  ;;  %v605_v23 = vsel %vm4844_vm2, 0, %v604_v19  ;;  %v4299_v27 = vld [vmem:[#allocation9 + $0x30] sm:$0xff]  }
  0xc4   : > { %606 = vst [vmem:[#allocation2 + $0x74] sm:$0x1] %v605_v23 }
  0xc5   : > { %3976 = vmatmul.mubr.bf16.gmra.mrb[4].mxu1 %v4178_v11  ;;  %v650_v11 = vld [vmem:[#allocation2 + $0x5c] sm:$0x1]  ;;  %v1138_v33 = vshrl.u32 %v3445_v29, 16  ;;  %v1141_v34 = vshll.u32 %v3445_v29, 16 }
  0xc6   : > { %3764 = vmatpush3.bf16.msra.mxu1 %v4189_v32  ;;  %v651_v13 = vsel %vm4844_vm2, 0, %v650_v11  ;;  %v815_v32 = vrot.slane %v813_v28, 5  ;;  %v715_v28 = vld [vmem:[#allocation2 + $0x2c] sm:$0x1] }
  0xc7   : > { %3765 = vmatprep.subr.bf16.mxu1 %v4191_v40  ;;  %652 = vst [vmem:[#allocation2 + $0x5c] sm:$0x1] %v651_v13  ;;  %v1140_v37 = vrot.slane %v1138_v33, 4  ;;  %v1143_v31 = vrot.slane %v1141_v34, 5  ;;  %v3414_v40 = vcombine.low %v697_v20, %v712_v36 }
  0xc8   : > { %v816_v35 = vor.u32 %v815_v32, %v812_v30  ;;  %v713_v32 = vld [vmem:[#allocation2 + $0x14] sm:$0x1] }
  0xc9   : > { %v1144_v42 = vor.u32 %v1143_v31, %v1140_v37  ;;  %v4894_v51 = vrot.slane %v3414_v40, 5 }
  0xca   : > { %3766 = vmatpush3.bf16.msra.mxu1 %v4193_v45  ;;  %v3460_v41 = vsel %vm3459_vm6, %v697_v20, %v816_v35  ;;  %v3454_v44 = vcombine.low %v696_v38, %v816_v35  ;;  %v759_v55 = vld [vmem:[#allocation2 + $0x6c] sm:$0x8] }
  0xcb   : > { %3767 = vmatprep.subr.bf16.mxu1 %v4195_v49  ;;  %v1361_v48 = vshrl.u32 %v3460_v41, 16  ;;  %v3455_v59 = vcombine.low %v4894_v51, %v720_v47  ;;  %v1364_v0 = vshll.u32 %v3460_v41, 16  ;;  %v3534_v3 = vcombine.low %v759_v55, %v1144_v42 }
  0xcd   : > { %v1363_v63 = vrot.slane %v1361_v48, 7  ;;  %v4898_v10 = vshrl.u32 %v3455_v59, 16  ;;  %v4900_v15 = vshrl.u32 %v3534_v3, 16 }
  0xce   : > { %3768 = vmatpush3.bf16.msra.mxu1 %v4197_v52 }
  0xcf   : > { %3769 = vmatprep.subr.bf16.mxu1 %v4199_v53  ;;  %v1366_v12 = vor.u32 %v1364_v0, %v1363_v63  ;;  %v3543_v33 = vrot.slane %v4898_v10, 11  ;;  %v3580_v31 = vrot.slane %v4900_v15, 11 }
  0xd2   : > { %3770 = vmatpush3.bf16.msra.mxu1 %v4201_v56  ;;  %v3540_v56 = vsel %vm3459_vm6, %v760_v26, %v1144_v42  ;;  %v1184_v26 = vunpack.c.h.b16 %v4894_v51 }
  0xd3   : > { %3771 = vmatprep.subr.bf16.mxu1 %v4203_v58  ;;  %v1858_v18 = vshll.u32 %v3540_v56, 16 }
  0xd6   : > { %3772 = vmatpush3.bf16.msra.mxu1 %v4205_v60  ;;  %v1356_v60 = vshrl.u32 %v3454_v44, 16 }
  0xd7   : > { %3773 = vmatprep.subr.bf16.mxu1 %v4207_v62 }
  0xd8   : > { %v3542_v11 = vrot.slane %v1356_v60, 11 }
  0xda   : > { %3774 = vmatpush3.bf16.msra.mxu1 %v4209_v4  ;;  %v1855_v4 = vshrl.u32 %v3540_v56, 16  ;;  %v4914_v16 = vsel %vm4907_vm8, %v3542_v11, %v1366_v12 }
  0xdb   : > { %3839 = vmatprep.subr.bf16.mxu1 %v4217_v8 }
  0xdc   : > { %v1857_v17 = vrot.slane %v1855_v4, 7 }
  0xde   : > { %v4921_v38 = vor.u32 %v1858_v18, %v1857_v17  ;;  %v698_v18 = vld [vmem:[#allocation2 + $0xc] sm:$0x8] }
 0x190   : > { %v3973_v43 = vpop.f32.mrb[0].mxu1 }
 0x191   : > { %v556_v45 = vadd.f32 %v3973_v43, %v3385_v39  ;;  %v547_v46 = vpop.f32.mrb[1].mxu1 }
 0x192   : > { %v548_v49 = vadd.f32 %v3385_v39, %v547_v46  ;;  %v3974_v50 = vpop.f32.mrb[2].mxu1  ;;  %v722_v46 = vld [vmem:[#allocation2 + $0x18] sm:$0x8] }
 0x193   : > { %v580_v52 = vmax.f32 %v556_v45, 0.0  ;;  %v559_v53 = vadd.f32 %v3974_v50, %v3385_v39  ;;  %v550_v54 = vpop.f32.mrb[3].mxu1  ;;  %v714_v50 = vld [vmem:[#allocation2 + $0x20] sm:$0x1] }
 0x194   : > { %v578_v57 = vmax.f32 %v548_v49, 0.0  ;;  %v551_v58 = vadd.f32 %v3385_v39, %v550_v54 }
 0x195   : > { %v3717_v61 = vpack.c.bf16 %v580_v52, %v580_v52  ;;  %v581_v62 = vmax.f32 %v559_v53, 0.0 }
 0x196   : > { %v3715_v1 = vpack.c.bf16 %v578_v57, %v578_v57  ;;  %v579_v2 = vmax.f32 %v551_v58, 0.0 }
 0x197   : > { %690 = vst [vmem:[#allocation2 + $0x28] sm:$0xf] %v3717_v61  ;;  %v3718_v5 = vpack.c.bf16 %v581_v62, %v581_v62  ;;  %v726_v62 = vld [vmem:[#allocation2 + $0x30] sm:$0x8] }
 0x198   : > { %688 = vst [vmem:[#allocation2 + $0x10] sm:$0xf] %v3715_v1  ;;  %v3716_v6 = vpack.c.bf16 %v579_v2, %v579_v2  ;;  %v3977_v7 = vpop.f32.mrb[4].mxu1 }
 0x199   : > { %691 = vst [vmem:[#allocation2 + $0x34] sm:$0xf] %v3718_v5  ;;  %v572_v8 = vadd.f32 %v3977_v7, %v3385_v39  ;;  %v563_v9 = vpop.f32.mrb[5].mxu1  ;;  %v724_v7 = vld [vmem:[#allocation2 + $0x24] sm:$0x8] }
 0x19a   : > { %689 = vst [vmem:[#allocation2 + $0x1c] sm:$0xf] %v3716_v6  ;;  %v564_v13 = vadd.f32 %v3385_v39, %v563_v9  ;;  %v3978_v14 = vpop.f32.mrb[6].mxu1 }
 0x19b   : > { %v584_v20 = vmax.f32 %v572_v8, 0.0  ;;  %v575_v21 = vadd.f32 %v3978_v14, %v3385_v39  ;;  %v566_v22 = vpop.f32.mrb[7].mxu1 }
 0x19c   : > { %v582_v24 = vmax.f32 %v564_v13, 0.0  ;;  %v567_v25 = vadd.f32 %v3385_v39, %v566_v22 }
 0x19d   : > { %v3721_v29 = vpack.c.bf16 %v584_v20, %v584_v20  ;;  %v585_v30 = vmax.f32 %v575_v21, 0.0 }
 0x19e   : > { %v3719_v34 = vpack.c.bf16 %v582_v24, %v582_v24  ;;  %v583_v35 = vmax.f32 %v567_v25, 0.0  ;;  %v4916_v36 = vld [vmem:[#allocation2 + $0x28] sm:$0xf] }
 0x19f   : > { %v4918_v37 = vld [vmem:[#allocation2 + $0x28] sm:$0xf]  ;;  %694 = vst [vmem:[#allocation2 + $0x58] sm:$0xf] %v3721_v29  ;;  %v3722_v39 = vpack.c.bf16 %v585_v30, %v585_v30  ;;  %v699_v40 = vld [vmem:[#allocation2 + $0x10] sm:$0xf]  ;;  %v3417_v42 = vcombine.low %v4916_v36, %v715_v28  ;;  %v4929_v44 = vcombine.low %v4916_v36, %v4916_v36 }
 0x1a0   : > { %v4923_v41 = vld [vmem:[#allocation2 + $0x10] sm:$0xf]  ;;  %v926_v43 = vunpack.c.l.b16 %v4918_v37  ;;  %692 = vst [vmem:[#allocation2 + $0x40] sm:$0xf] %v3719_v34  ;;  %v3720_v45 = vpack.c.bf16 %v583_v35, %v583_v35  ;;  %v3407_v47 = vcombine.low %v699_v40, %v699_v40  ;;  %v3415_v48 = vcombine.low %v699_v40, %v713_v32  ;;  %v4932_v51 = vld [vmem:[#allocation2 + $0x34] sm:$0xf] }
 0x1a1   : > { %v922_v49 = vunpack.c.l.b16 %v4923_v41  ;;  %695 = vst [vmem:[#allocation2 + $0x64] sm:$0xf] %v3722_v39  ;;  %v4934_v52 = vld [vmem:[#allocation2 + $0x1c] sm:$0xf]  ;;  %v4938_v53 = vcombine.low %v4923_v41, %v4923_v41  ;;  %v900_v55 = vrot.slane %v3417_v42, 5  ;;  %v928_v56 = vunpack.c.l.b16 %v4932_v51 }
 0x1a2   : > { %v4940_v54 = vld [vmem:[#allocation2 + $0x1c] sm:$0xf]  ;;  %v834_v57 = vshrl.u32 %v4929_v44, 16  ;;  %693 = vst [vmem:[#allocation2 + $0x4c] sm:$0xf] %v3720_v45  ;;  %v898_v58 = vrot.slane %v3415_v48, 5  ;;  %v924_v59 = vunpack.c.l.b16 %v4934_v52  ;;  %v4947_v60 = vcombine.low %v4934_v52, %v4934_v52 }
 0x1a3   : > { %v1279_v61 = vpack.c.b16 %v922_v49, %v1184_v26  ;;  %v818_v63 = vshrl.u32 %v3407_v47, 16  ;;  %v821_v0 = vshll.u32 %v3407_v47, 16  ;;  %v3416_v1 = vcombine.low %v4940_v54, %v714_v50 }
 0x1a4   : > { %v1220_v2 = vunpack.c.h.b16 %v900_v55  ;;  %v1196_v3 = vunpack.c.h.b16 %v898_v58  ;;  %v3466_v4 = vcombine.low %v898_v58, %v722_v46  ;;  %v3488_v12 = vcombine.low %v900_v55, %v726_v62 }
 0x1a5   : > { %v1374_v5 = vshrl.u32 %v1279_v61, 16  ;;  %v1377_v6 = vshll.u32 %v1279_v61, 16  ;;  %v820_v8 = vrot.slane %v818_v63, 4  ;;  %v823_v9 = vrot.slane %v821_v0, 5  ;;  %v4222_v63 = vld [vmem:[#allocation8 + $0x180] sm:$0xff]  }
 0x1a6   : > { %v899_v11 = vrot.slane %v3416_v1, 5  ;;  %v1289_v13 = vpack.c.b16 %v924_v59, %v1196_v3  ;;  %v1434_v17 = vshrl.u32 %v3466_v4, 16  ;;  %v1309_v19 = vpack.c.b16 %v928_v56, %v1220_v2  ;;  %v716_v1 = vld [vmem:[#allocation2 + $0x38] sm:$0x1] }
 0x1a7   : > { %v1376_v14 = vrot.slane %v1374_v5, 7  ;;  %v824_v20 = vor.u32 %v823_v9, %v820_v8  ;;  %v1564_v23 = vshrl.u32 %v3488_v12, 16  ;;  %v3408_v10 = vcombine.low %v4940_v54, %v4940_v54  ;;  %v717_v8 = vld [vmem:[#allocation2 + $0x44] sm:$0x1] }
 0x1a8   : > { %v1208_v21 = vunpack.c.h.b16 %v899_v11  ;;  %v3477_v22 = vcombine.low %v899_v11, %v724_v7  ;;  %v3548_v25 = vrot.slane %v1434_v17, 11  ;;  %v1439_v26 = vshrl.u32 %v1289_v13, 16  ;;  %v4959_v7 = vld [vmem:[#allocation2 + $0x34] sm:$0xf]  ;;  %v4966_v17 = vld [vmem:[#allocation2 + $0x40] sm:$0xf] }
 0x1a9   : > { %v1379_v24 = vor.u32 %v1377_v6, %v1376_v14  ;;  %v1442_v28 = vshll.u32 %v1289_v13, 16  ;;  %v3465_v29 = vcombine.low %v698_v18, %v824_v20  ;;  %v3471_v30 = vsel %vm3459_vm6, %v699_v40, %v824_v20  ;;  %v4226_v6 = vld [vmem:[#allocation8 + $0x1c8] sm:$0xff]   ;;  %v4221_v20 = vld [vmem:[#allocation8 + $0x100] sm:$0xff]  }
 0x1aa   : > { %v1299_v32 = vpack.c.b16 %v926_v43, %v1208_v21  ;;  %v1499_v34 = vshrl.u32 %v3477_v22, 16  ;;  %v1441_v39 = vrot.slane %v1439_v26, 7  ;;  %v1426_v42 = vshrl.u32 %v3471_v30, 16  ;;  %v4964_v14 = vld [vmem:[#allocation2 + $0x40] sm:$0xf] }
 0x1ab   : > { %v1380_v35 = vsel %vm4907_vm8, %v3543_v33, %v1379_v24  ;;  %v1429_v45 = vshll.u32 %v3471_v30, 16  ;;  %v1421_v46 = vshrl.u32 %v3465_v29, 16  ;;  %v3558_v56 = vrot.slane %v1564_v23, 11  ;;  %v702_v21 = vld [vmem:[#allocation2 + $0x24] sm:$0x8] }
 0x1ac   : > { %v3553_v47 = vrot.slane %v1499_v34, 11  ;;  %v1504_v48 = vshrl.u32 %v1299_v32, 16  ;;  %v1507_v49 = vshll.u32 %v1299_v32, 16  ;;  %v1444_v50 = vor.u32 %v1442_v28, %v1441_v39  ;;  %v4225_v23 = vld [vmem:[#allocation8 + $0x148] sm:$0xff]   ;;  %v4977_v28 = vld [vmem:[#allocation2 + $0x4c] sm:$0xf] }
 0x1ad   : > { %v1428_v55 = vrot.slane %v1426_v42, 7  ;;  %v1569_v58 = vshrl.u32 %v1309_v19, 16  ;;  %v3547_v59 = vrot.slane %v1421_v46, 11  ;;  %v1572_v43 = vshll.u32 %v1309_v19, 16  ;;  %v4979_v29 = vld [vmem:[#allocation2 + $0x50] sm:$0x1] }
 0x1ae   : > { %v1506_v40 = vrot.slane %v1504_v48, 7  ;;  %v1445_v33 = vsel %vm4907_vm8, %v3548_v25, %v1444_v50  ;;  %v836_v0 = vrot.slane %v834_v57, 4  ;;  %v826_v5 = vshrl.u32 %v3408_v10, 16  ;;  %v700_v30 = vld [vmem:[#allocation2 + $0x18] sm:$0x8]  ;;  %v4228_v32 = vld [vmem:[#allocation8 + $0x188] sm:$0xff]  }
 0x1af   : > { %v1431_v61 = vor.u32 %v1429_v45, %v1428_v55  ;;  %v1571_v62 = vrot.slane %v1569_v58, 7  ;;  %v3585_v2 = vcombine.low %v1380_v35, %v1445_v33  ;;  %v3586_v3 = vcombine.high %v1380_v35, %v1445_v33  ;;  %v4983_v35 = vld [vmem:[#allocation2 + $0x4c] sm:$0xf]  ;;  %v4227_v50 = vld [vmem:[#allocation8 + $0x108] sm:$0xff]  }
 0x1b0   : > { %v1509_v4 = vor.u32 %v1507_v49, %v1506_v40  ;;  %v829_v12 = vshll.u32 %v3408_v10, 16  ;;  %v837_v13 = vshll.u32 %v4929_v44, 16  ;;  %v828_v22 = vrot.slane %v826_v5, 4 }
 0x1b1   : > { %v1432_v9 = vsel %vm4907_vm8, %v3547_v59, %v1431_v61  ;;  %v1574_v11 = vor.u32 %v1572_v43, %v1571_v62  ;;  %2699 = vmatprep.mubr.bf16.mxu0 %v3586_v3  ;;  %v3418_v26 = vcombine.low %v4959_v7, %v716_v1  ;;  %v3419_v39 = vcombine.low %v4964_v14, %v717_v8  ;;  %v4229_v61 = vld [vmem:[#allocation8 + $0x150] sm:$0xff]   ;;  %v728_v62 = vld [vmem:[#allocation2 + $0x3c] sm:$0x8] }
 0x1b2   : > { %v3583_v57 = vcombine.low %v4914_v16, %v1432_v9  ;;  %v3584_v18 = vcombine.high %v4914_v16, %v1432_v9  ;;  %v4972_v19 = vsel %vm4907_vm8, %v3553_v47, %v1509_v4  ;;  %2700 = vmatmul.mubr.bf16.vlgmr.msra.gmra.mrb[0].mxu0 %v3585_v2  ;;  %v831_v24 = vrot.slane %v829_v12, 5  ;;  %v4230_v47 = vld [vmem:[#allocation8 + $0x1d0] sm:$0xff]  }
 0x1b3   : > { %v1575_v44 = vsel %vm4907_vm8, %v3558_v56, %v1574_v11  ;;  %v839_v25 = vrot.slane %v837_v13, 5  ;;  %3880 = vmatpush3.bf16.msra.mxu0 %v4222_v63  ;;  %v930_v42 = vunpack.c.l.b16 %v4966_v17  ;;  %v901_v48 = vrot.slane %v3418_v26, 5  ;;  %v730_v63 = vld [vmem:[#allocation2 + $0x48] sm:$0x8]  ;;  %v4240_v26 = vld [vmem:[#allocation8 + $0x198] sm:$0xff]  }
 0x1b4   : > { %2634 = vmatprep.mubr.bf16.mxu1 %v3584_v18  ;;  %v3595_v16 = vcombine.high %v4972_v19, %v1575_v44  ;;  %v3594_v34 = vcombine.low %v4972_v19, %v1575_v44  ;;  %v832_v45 = vor.u32 %v831_v24, %v828_v22  ;;  %3881 = vmatprep.subr.bf16.mxu0 %v4226_v6  ;;  %v932_v49 = vunpack.c.l.b16 %v4983_v35  ;;  %v4234_v4 = vld [vmem:[#allocation8 + $0x190] sm:$0xff]   ;;  %v4237_v22 = vld [vmem:[#allocation8 + $0x158] sm:$0xff]  }
 0x1b5   : > { %2635 = vmatmul.mubr.bf16.vlgmr.msra.gmra.mrb[8].mxu1 %v3583_v57  ;;  %v840_v46 = vor.u32 %v839_v25, %v836_v0  ;;  %v902_v55 = vrot.slane %v3419_v39, 5  ;;  %v4990_v56 = vcombine.low %v4959_v7, %v4959_v7  ;;  %v4994_v58 = vcombine.low %v4964_v14, %v4964_v14  ;;  %v4233_v57 = vld [vmem:[#allocation8 + $0x110] sm:$0xff]  }
 0x1b6   : > { %2707 = vmatprep.mubr.bf16.mxu0 %v3595_v16  ;;  %3840 = vmatpush3.bf16.msra.mxu1 %v4221_v20  ;;  %v3420_v59 = vcombine.low %v4977_v28, %v4979_v29  ;;  %v3476_v40 = vcombine.low %v700_v30, %v832_v45  ;;  %v3482_v43 = vsel %vm3459_vm6, %v4940_v54, %v832_v45  ;;  %v1232_v8 = vunpack.c.h.b16 %v901_v48  ;;  %v4238_v54 = vld [vmem:[#allocation8 + $0x1d8] sm:$0xff]   ;;  %v4242_v45 = vld [vmem:[#allocation8 + $0x1e0] sm:$0xff]  }
 0x1b7   : > { %v3487_v10 = vcombine.low %v702_v21, %v840_v46  ;;  %v3493_v33 = vsel %vm3459_vm6, %v4916_v36, %v840_v46  ;;  %3841 = vmatprep.subr.bf16.mxu1 %v4225_v23  ;;  %v1491_v0 = vshrl.u32 %v3482_v43, 16  ;;  %v1494_v1 = vshll.u32 %v3482_v43, 16  ;;  %3882 = vmatpush3.bf16.msra.mxu0 %v4228_v32  ;;  %v4239_v43 = vld [vmem:[#allocation8 + $0x118] sm:$0xff]  }
 0x1b8   : > { %v1556_v2 = vshrl.u32 %v3493_v33, 16  ;;  %v1559_v3 = vshll.u32 %v3493_v33, 16  ;;  %v1486_v5 = vshrl.u32 %v3476_v40, 16  ;;  %3883 = vmatprep.subr.bf16.mxu0 %v4230_v47  ;;  %v1244_v9 = vunpack.c.h.b16 %v902_v55 }
 0x1b9   : > { %v1551_v6 = vshrl.u32 %v3487_v10, 16  ;;  %v1493_v11 = vrot.slane %v1491_v0, 7  ;;  %v3499_v36 = vcombine.low %v901_v48, %v728_v62  ;;  %v3510_v13 = vcombine.low %v902_v55, %v730_v63  ;;  %v719_v48 = vld [vmem:[#allocation2 + $0x5c] sm:$0x1]  ;;  %v5010_v0 = vld [vmem:[#allocation2 + $0x58] sm:$0xf] }
 0x1ba   : > { %v1558_v12 = vrot.slane %v1556_v2, 7  ;;  %3842 = vmatpush3.bf16.msra.mxu1 %v4227_v50  ;;  %v3552_v18 = vrot.slane %v1486_v5, 11  ;;  %2708 = vmatmul.mubr.bf16.gmra.mrb[4].mxu0 %v3594_v34  ;;  %v1319_v20 = vpack.c.b16 %v930_v42, %v1232_v8  ;;  %v1329_v21 = vpack.c.b16 %v932_v49, %v1244_v9  ;;  %v4241_v10 = vld [vmem:[#allocation8 + $0x160] sm:$0xff]  }
 0x1bb   : > { %v3557_v19 = vrot.slane %v1551_v6, 11  ;;  %3843 = vmatprep.subr.bf16.mxu1 %v4229_v61  ;;  %v1496_v23 = vor.u32 %v1494_v1, %v1493_v11  ;;  %v1629_v24 = vshrl.u32 %v3499_v36, 16  ;;  %v1694_v25 = vshrl.u32 %v3510_v13, 16  ;;  %3884 = vmatpush3.bf16.msra.mxu0 %v4234_v4  ;;  %v4246_v6 = vld [vmem:[#allocation8 + $0x1a0] sm:$0xff]   ;;  %v704_v36 = vld [vmem:[#allocation2 + $0x30] sm:$0x8] }
 0x1bc   : > { %v1561_v44 = vor.u32 %v1559_v3, %v1558_v12  ;;  %v1634_v16 = vshrl.u32 %v1319_v20, 16  ;;  %v1637_v30 = vshll.u32 %v1319_v20, 16  ;;  %v1699_v32 = vshrl.u32 %v1329_v21, 16  ;;  %3885 = vmatprep.subr.bf16.mxu0 %v4238_v54  ;;  %v732_v3 = vld [vmem:[#allocation2 + $0x54] sm:$0x8] }
 0x1bd   : > { %v1702_v39 = vshll.u32 %v1329_v21, 16  ;;  %v1497_v46 = vsel %vm4907_vm8, %v3552_v18, %v1496_v23  ;;  %v3563_v42 = vrot.slane %v1629_v24, 11  ;;  %v3568_v47 = vrot.slane %v1694_v25, 11  ;;  %v5016_v54 = vld [vmem:[#allocation2 + $0x58] sm:$0xf]  ;;  %v4249_v23 = vld [vmem:[#allocation8 + $0x168] sm:$0xff]  }
 0x1be   : > { %v1562_v34 = vsel %vm4907_vm8, %v3557_v19, %v1561_v44  ;;  %3844 = vmatpush3.bf16.msra.mxu1 %v4233_v57  ;;  %v1636_v55 = vrot.slane %v1634_v16, 7  ;;  %v1701_v40 = vrot.slane %v1699_v32, 7  ;;  %v842_v33 = vshrl.u32 %v4990_v56, 16  ;;  %v706_v13 = vld [vmem:[#allocation2 + $0x3c] sm:$0x8]  ;;  %v4250_v44 = vld [vmem:[#allocation8 + $0x1e8] sm:$0xff]  }
 0x1bf   : > { %v3593_v49 = vcombine.high %v1497_v46, %v1562_v34  ;;  %v3592_v50 = vcombine.low %v1497_v46, %v1562_v34  ;;  %3845 = vmatprep.subr.bf16.mxu1 %v4237_v22  ;;  %v845_v61 = vshll.u32 %v4990_v56, 16  ;;  %v850_v62 = vshrl.u32 %v4994_v58, 16  ;;  %3886 = vmatpush3.bf16.msra.mxu0 %v4240_v26  ;;  %v5023_v22 = vld [vmem:[#allocation2 + $0x64] sm:$0xf]  ;;  %v734_v24 = vld [vmem:[#allocation2 + $0x60] sm:$0x8] }
 0x1c0   : > { %v853_v63 = vshll.u32 %v4994_v58, 16  ;;  %v1639_v1 = vor.u32 %v1637_v30, %v1636_v55  ;;  %v1704_v2 = vor.u32 %v1702_v39, %v1701_v40  ;;  %3887 = vmatprep.subr.bf16.mxu0 %v4242_v45  ;;  %v3421_v4 = vcombine.low %v5010_v0, %v719_v48  ;;  %v4252_v32 = vld [vmem:[#allocation8 + $0x1a8] sm:$0xff]  }
 0x1c1   : > { %2642 = vmatprep.mubr.bf16.mxu1 %v3593_v49  ;;  %v903_v5 = vrot.slane %v3420_v59, 5  ;;  %v844_v56 = vrot.slane %v842_v33, 4  ;;  %v847_v8 = vrot.slane %v845_v61, 5  ;;  %v852_v9 = vrot.slane %v850_v62, 4  ;;  %v4245_v59 = vld [vmem:[#allocation8 + $0x120] sm:$0xff]   ;;  %v4251_v55 = vld [vmem:[#allocation8 + $0x128] sm:$0xff]  }
 0x1c2   : > { %2643 = vmatmul.mubr.bf16.gmra.mrb[12].mxu1 %v3592_v50  ;;  %v855_v58 = vrot.slane %v853_v63, 5  ;;  %v1640_v11 = vsel %vm4907_vm8, %v3563_v42, %v1639_v1  ;;  %v1705_v12 = vsel %vm4907_vm8, %v3568_v47, %v1704_v2  ;;  %v904_v57 = vrot.slane %v3421_v4, 5  ;;  %v4254_v42 = vld [vmem:[#allocation8 + $0x1f0] sm:$0xff]  }
 0x1c3   : > { %3846 = vmatpush3.bf16.msra.mxu1 %v4239_v43  ;;  %v934_v29 = vunpack.c.l.b16 %v5016_v54  ;;  %v3604_v18 = vcombine.high %v1640_v11, %v1705_v12  ;;  %v848_v19 = vor.u32 %v847_v8, %v844_v56  ;;  %v3603_v21 = vcombine.low %v1640_v11, %v1705_v12  ;;  %3888 = vmatpush3.bf16.msra.mxu0 %v4246_v6  ;;  %v4253_v61 = vld [vmem:[#allocation8 + $0x170] sm:$0xff]   ;;  %v4261_v6 = vld [vmem:[#allocation8 + $0x1f8] sm:$0xff]  }
 0x1c4   : > { %v856_v20 = vor.u32 %v855_v58, %v852_v9  ;;  %3847 = vmatprep.subr.bf16.mxu1 %v4241_v10  ;;  %v936_v25 = vunpack.c.l.b16 %v5023_v22  ;;  %v1256_v26 = vunpack.c.h.b16 %v903_v5  ;;  %v1268_v16 = vunpack.c.h.b16 %v904_v57  ;;  %3889 = vmatprep.subr.bf16.mxu0 %v4250_v44  ;;  %v4255_v11 = vld [vmem:[#allocation8 + $0x130] sm:$0xff]  }
 0x1c5   : > { %v3521_v30 = vcombine.low %v903_v5, %v732_v3  ;;  %2715 = vmatprep.mubr.bf16.mxu0 %v3604_v18  ;;  %v3498_v39 = vcombine.low %v704_v36, %v848_v19  ;;  %v3504_v45 = vsel %vm3459_vm6, %v4959_v7, %v848_v19  ;;  %v3532_v33 = vcombine.low %v904_v57, %v734_v24 }
 0x1c6   : > { %v3509_v46 = vcombine.low %v706_v13, %v856_v20  ;;  %v3515_v34 = vsel %vm3459_vm6, %v4964_v14, %v856_v20  ;;  %v1621_v47 = vshrl.u32 %v3504_v45, 16  ;;  %v1624_v48 = vshll.u32 %v3504_v45, 16  ;;  %2716 = vmatmul.mubr.bf16.gmra.mrb[8].mxu0 %v3603_v21  ;;  %v4256_v14 = vld [vmem:[#allocation8 + $0x1b0] sm:$0xff]   ;;  %v5038_v20 = vld [vmem:[#allocation2 + $0x1c] sm:$0xf] }
 0x1c7   : > { %v1686_v49 = vshrl.u32 %v3515_v34, 16  ;;  %v1689_v50 = vshll.u32 %v3515_v34, 16  ;;  %3848 = vmatpush3.bf16.msra.mxu1 %v4245_v59  ;;  %v1616_v40 = vshrl.u32 %v3498_v39, 16  ;;  %v1339_v10 = vpack.c.b16 %v934_v29, %v1256_v26  ;;  %3890 = vmatpush3.bf16.msra.mxu0 %v4252_v32  ;;  %v5040_v21 = vld [vmem:[#allocation2 + $0x28] sm:$0xf] }
 0x1c8   : > { %v1681_v43 = vshrl.u32 %v3509_v46, 16  ;;  %3849 = vmatprep.subr.bf16.mxu1 %v4249_v23  ;;  %v1623_v7 = vrot.slane %v1621_v47, 7  ;;  %v1349_v63 = vpack.c.b16 %v936_v25, %v1268_v16  ;;  %v1759_v1 = vshrl.u32 %v3521_v30, 16  ;;  %3891 = vmatprep.subr.bf16.mxu0 %v4254_v42  ;;  %v4260_v23 = vld [vmem:[#allocation8 + $0x178] sm:$0xff]  }
 0x1c9   : > { %v1688_v62 = vrot.slane %v1686_v49, 7  ;;  %v3562_v2 = vrot.slane %v1616_v40, 11  ;;  %v1764_v4 = vshrl.u32 %v1339_v10, 16  ;;  %v1767_v5 = vshll.u32 %v1339_v10, 16  ;;  %v4263_v16 = vld [vmem:[#allocation8 + $0x1b8] sm:$0xff]   ;;  %v5048_v49 = vld [vmem:[#allocation8 + $0x200] sm:$0xff]  }
 0x1ca   : > { %v3567_v3 = vrot.slane %v1681_v43, 11  ;;  %v1626_v56 = vor.u32 %v1624_v48, %v1623_v7  ;;  %v3573_v9 = vrot.slane %v1759_v1, 11  ;;  %v1824_v58 = vshrl.u32 %v3532_v33, 16  ;;  %v4262_v46 = vld [vmem:[#allocation8 + $0x138] sm:$0xff]  }
 0x1cb   : > { %v1691_v8 = vor.u32 %v1689_v50, %v1688_v62  ;;  %3850 = vmatpush3.bf16.msra.mxu1 %v4251_v55  ;;  %v1766_v12 = vrot.slane %v1764_v4, 7  ;;  %v1829_v36 = vshrl.u32 %v1349_v63, 16  ;;  %v1832_v13 = vshll.u32 %v1349_v63, 16  ;;  %3892 = vmatpush3.bf16.msra.mxu0 %v4256_v14  ;;  %v710_v50 = vld [vmem:[#allocation2 + $0x54] sm:$0x8] }
 0x1cc   : > { %v3412_v57 = vcombine.low %v4977_v28, %v4977_v28  ;;  %3851 = vmatprep.subr.bf16.mxu1 %v4253_v61  ;;  %v1627_v29 = vsel %vm4907_vm8, %v3562_v2, %v1626_v56  ;;  %v3578_v18 = vrot.slane %v1824_v58, 11  ;;  %v3413_v19 = vcombine.low %v5010_v0, %v5010_v0  ;;  %3893 = vmatprep.subr.bf16.mxu0 %v4261_v6  ;;  %v708_v61 = vld [vmem:[#allocation2 + $0x48] sm:$0x8] }
 0x1cd   : > { %v1692_v59 = vsel %vm4907_vm8, %v3567_v3, %v1691_v8  ;;  %v1769_v25 = vor.u32 %v1767_v5, %v1766_v12  ;;  %v1831_v26 = vrot.slane %v1829_v36, 7  ;;  %v3438_v47 = vcombine.low %v5038_v20, %v5038_v20 }
 0x1ce   : > { %v3602_v44 = vcombine.high %v1627_v29, %v1692_v59  ;;  %v3601_v24 = vcombine.low %v1627_v29, %v1692_v59  ;;  %v858_v30 = vshrl.u32 %v3412_v57, 16  ;;  %v861_v32 = vshll.u32 %v3412_v57, 16  ;;  %v745_v29 = vld [vmem:[#allocation2 + $0x18] sm:$0x8] }
 0x1cf   : > { %v866_v39 = vshrl.u32 %v3413_v19, 16  ;;  %v869_v45 = vshll.u32 %v3413_v19, 16  ;;  %3852 = vmatpush3.bf16.msra.mxu1 %v4255_v11  ;;  %v1770_v34 = vsel %vm4907_vm8, %v3573_v9, %v1769_v25  ;;  %v1834_v42 = vor.u32 %v1832_v13, %v1831_v26  ;;  %3894 = vmatpush3.bf16.msra.mxu0 %v4263_v16  ;;  %v747_v25 = vld [vmem:[#allocation2 + $0x24] sm:$0x8] }
 0x1d0   : > { %2650 = vmatprep.mubr.bf16.mxu1 %v3602_v44  ;;  %v3439_v48 = vcombine.low %v5040_v21, %v5040_v21  ;;  %v860_v55 = vrot.slane %v858_v30, 4  ;;  %v863_v40 = vrot.slane %v861_v32, 5  ;;  %3853 = vmatprep.subr.bf16.mxu1 %v4260_v23  ;;  %v1082_v7 = vshrl.u32 %v3438_v47, 16 }
 0x1d1   : > { %2651 = vmatmul.mubr.bf16.gmra.mrb[16].mxu1 %v3601_v24  ;;  %v868_v43 = vrot.slane %v866_v39, 4  ;;  %v871_v10 = vrot.slane %v869_v45, 5  ;;  %v1835_v33 = vsel %vm4907_vm8, %v3578_v18, %v1834_v42  ;;  %v1085_v62 = vshll.u32 %v3438_v47, 16 }
 0x1d2   : > { %v1090_v63 = vshrl.u32 %v3439_v48, 16  ;;  %v3613_v1 = vcombine.high %v1770_v34, %v1835_v33  ;;  %v864_v14 = vor.u32 %v863_v40, %v860_v55  ;;  %v3612_v3 = vcombine.low %v1770_v34, %v1835_v33 }
 0x1d3   : > { %v872_v2 = vor.u32 %v871_v10, %v868_v43  ;;  %3854 = vmatpush3.bf16.msra.mxu1 %v4262_v46  ;;  %v1084_v4 = vrot.slane %v1082_v7, 4  ;;  %v1087_v5 = vrot.slane %v1085_v62, 5  ;;  %v1093_v56 = vshll.u32 %v3439_v48, 16  ;;  %v736_v10 = vld [vmem:[#allocation2 + $0x14] sm:$0x1] }
 0x1d4   : > { %v1092_v6 = vrot.slane %v1090_v63, 4  ;;  %3979 = vmatprep.subr.bf16.mxu1 %v5048_v49  ;;  %2723 = vmatprep.mubr.bf16.mxu0 %v3613_v1  ;;  %v3520_v8 = vcombine.low %v708_v61, %v864_v14  ;;  %v3526_v9 = vsel %vm3459_vm6, %v4977_v28, %v864_v14  ;;  %v946_v26 = vshrl.u32 %v4938_v53, 16  ;;  %v737_v63 = vld [vmem:[#allocation2 + $0x20] sm:$0x1] }
 0x1d5   : > { %v3531_v58 = vcombine.low %v710_v50, %v872_v2  ;;  %v3537_v11 = vsel %vm3459_vm6, %v5010_v0, %v872_v2  ;;  %v1751_v12 = vshrl.u32 %v3526_v9, 16  ;;  %v1754_v36 = vshll.u32 %v3526_v9, 16  ;;  %2724 = vmatmul.mubr.bf16.gmra.mrb[12].mxu0 %v3612_v3  ;;  %v752_v9 = vld [vmem:[#allocation2 + $0x40] sm:$0xf] }
 0x1d6   : > { %v1816_v13 = vshrl.u32 %v3537_v11, 16  ;;  %v1819_v57 = vshll.u32 %v3537_v11, 16  ;;  %v1746_v59 = vshrl.u32 %v3520_v8, 16  ;;  %v1088_v19 = vor.u32 %v1087_v5, %v1084_v4  ;;  %v750_v8 = vld [vmem:[#allocation2 + $0x34] sm:$0xf] }
 0x1d7   : > { %v1811_v18 = vshrl.u32 %v3531_v58, 16  ;;  %v1095_v23 = vrot.slane %v1093_v56, 5  ;;  %v1753_v44 = vrot.slane %v1751_v12, 7  ;;  %v949_v28 = vshll.u32 %v4938_v53, 16 }
 0x1d8   : > { %v1818_v24 = vrot.slane %v1816_v13, 7  ;;  %v3572_v16 = vrot.slane %v1746_v59, 11  ;;  %v3457_v32 = vcombine.low %v745_v29, %v1088_v19  ;;  %v3463_v46 = vsel %vm3459_vm6, %v5038_v20, %v1088_v19 }
 0x1d9   : > { %v3577_v30 = vrot.slane %v1811_v18, 11  ;;  %v1096_v0 = vor.u32 %v1095_v23, %v1092_v6  ;;  %v1756_v39 = vor.u32 %v1754_v36, %v1753_v44  ;;  %v948_v34 = vrot.slane %v946_v26, 4 }
 0x1da   : > { %v1821_v45 = vor.u32 %v1819_v57, %v1818_v24  ;;  %v1395_v48 = vshrl.u32 %v3457_v32, 16  ;;  %v1400_v50 = vshrl.u32 %v3463_v46, 16  ;;  %v1403_v40 = vshll.u32 %v3463_v46, 16 }
 0x1db   : > { %v3468_v42 = vcombine.low %v747_v25, %v1096_v0  ;;  %v3474_v47 = vsel %vm3459_vm6, %v5040_v21, %v1096_v0  ;;  %v1757_v55 = vsel %vm4907_vm8, %v3572_v16, %v1756_v39  ;;  %v951_v3 = vrot.slane %v949_v28, 5  ;;  %v763_v39 = vld [vmem:[#allocation2 + $0x38] sm:$0x1] }
 0x1dc   : > { %v1822_v53 = vsel %vm4907_vm8, %v3577_v30, %v1821_v45  ;;  %v1465_v43 = vshrl.u32 %v3474_v47, 16  ;;  %v3545_v7 = vrot.slane %v1395_v48, 11  ;;  %v1402_v62 = vrot.slane %v1400_v50, 7 }
 0x1dd   : > { %v3611_v33 = vcombine.high %v1757_v55, %v1822_v53  ;;  %v3610_v61 = vcombine.low %v1757_v55, %v1822_v53  ;;  %v1460_v1 = vshrl.u32 %v3468_v42, 16  ;;  %v1468_v2 = vshll.u32 %v3474_v47, 16 }
 0x1de   : > { %v1467_v14 = vrot.slane %v1465_v43, 7  ;;  %v1405_v4 = vor.u32 %v1403_v40, %v1402_v62  ;;  %v954_v5 = vshrl.u32 %v4947_v60, 16  ;;  %v957_v6 = vshll.u32 %v4947_v60, 16  ;;  %v749_v43 = vld [vmem:[#allocation2 + $0x30] sm:$0x8] }
 0x1df   : > { %2658 = vmatprep.mubr.bf16.mxu1 %v3611_v33  ;;  %v3430_v56 = vcombine.low %v4923_v41, %v736_v10  ;;  %v3550_v58 = vrot.slane %v1460_v1, 11  ;;  %v952_v12 = vor.u32 %v951_v3, %v948_v34  ;;  %v3431_v36 = vcombine.low %v4934_v52, %v737_v63  ;;  %v764_v34 = vld [vmem:[#allocation2 + $0x44] sm:$0x1]  ;;  %v751_v1 = vld [vmem:[#allocation2 + $0x3c] sm:$0x8] }
 0x1e0   : > { %2659 = vmatmul.mubr.bf16.gmra.mrb[20].mxu1 %v3610_v61  ;;  %v1470_v11 = vor.u32 %v1468_v2, %v1467_v14  ;;  %v1406_v13 = vsel %vm4907_vm8, %v3545_v7, %v1405_v4  ;;  %v956_v57 = vrot.slane %v954_v5, 4  ;;  %v959_v29 = vrot.slane %v957_v6, 5 }
 0x1e1   : > { %v1033_v59 = vrot.slane %v3430_v56, 5  ;;  %v1034_v60 = vrot.slane %v3431_v36, 5  ;;  %v3440_v19 = vcombine.low %v750_v8, %v750_v8  ;;  %v3441_v41 = vcombine.low %v752_v9, %v752_v9 }
 0x1e2   : > { %v1471_v18 = vsel %vm4907_vm8, %v3550_v58, %v1470_v11  ;;  %v960_v24 = vor.u32 %v959_v29, %v956_v57  ;;  %v5080_v48 = vsel %vm4907_vm8, %v3580_v31, %v4921_v38  ;;  %v3448_v14 = vcombine.low %v750_v8, %v763_v39 }
 0x1e3   : > { %v3589_v23 = vcombine.low %v1406_v13, %v1471_v18  ;;  %v3590_v44 = vcombine.high %v1406_v13, %v1471_v18  ;;  %v3456_v25 = vcombine.low %v952_v12, %v1033_v59  ;;  %v3461_v26 = vcombine.high %v952_v12, %v1033_v59  ;;  %v738_v59 = vld [vmem:[#allocation2 + $0x2c] sm:$0x1]  ;;  %v739_v18 = vld [vmem:[#allocation2 + $0x38] sm:$0x1] }
 0x1e4   : > { %v1098_v28 = vshrl.u32 %v3440_v19, 16  ;;  %v1101_v16 = vshll.u32 %v3440_v19, 16  ;;  %v1106_v52 = vshrl.u32 %v3441_v41, 16  ;;  %v3467_v30 = vcombine.low %v960_v24, %v1034_v60 }
 0x1e5   : > { %2829 = vmatprep.mubr.bf16.mxu0 %v3590_v44  ;;  %v3472_v0 = vcombine.high %v960_v24, %v1034_v60  ;;  %v1382_v32 = vshrl.u32 %v3456_v25, 16  ;;  %v1109_v45 = vshll.u32 %v3441_v41, 16  ;;  %v1387_v46 = vshrl.u32 %v3461_v26, 16 }
 0x1e6   : > { %2830 = vmatmul.mubr.bf16.vlgmr.msra.gmra.mrb[16].mxu0 %v3589_v23  ;;  %v1100_v42 = vrot.slane %v1098_v28, 4  ;;  %v1103_v47 = vrot.slane %v1101_v16, 5  ;;  %v1390_v55 = vshll.u32 %v3461_v26, 16  ;;  %v1447_v53 = vshrl.u32 %v3467_v30, 16  ;;  %v4272_v26 = vld [vmem:[#allocation8 + $0x208] sm:$0xff]  }
 0x1e7   : > { %v3544_v50 = vrot.slane %v1382_v32, 11  ;;  %v1452_v40 = vshrl.u32 %v3472_v0, 16  ;;  %v1389_v10 = vrot.slane %v1387_v46, 7  ;;  %v1108_v61 = vrot.slane %v1106_v52, 4 }
 0x1e8   : > { %v1104_v33 = vor.u32 %v1103_v47, %v1100_v42  ;;  %v1111_v7 = vrot.slane %v1109_v45, 5  ;;  %v1455_v63 = vshll.u32 %v3472_v0, 16  ;;  %v3449_v2 = vcombine.low %v752_v9, %v764_v34  ;;  %v5102_v0 = vld [vmem:[#allocation2 + $0x4c] sm:$0xf]  ;;  %v5104_v34 = vld [vmem:[#allocation2 + $0x58] sm:$0xf] }
 0x1e9   : > { %v1454_v62 = vrot.slane %v1452_v40, 7  ;;  %v1392_v3 = vor.u32 %v1390_v55, %v1389_v10  ;;  %v3549_v38 = vrot.slane %v1447_v53, 11  ;;  %v5083_v6 = vrot.slane %v3448_v14, 5 }
 0x1ea   : > { %v1112_v15 = vor.u32 %v1111_v7, %v1108_v61  ;;  %v3479_v4 = vcombine.low %v749_v43, %v1104_v33  ;;  %v3485_v31 = vsel %vm3459_vm6, %v750_v8, %v1104_v33  ;;  %v5085_v58 = vrot.slane %v3449_v2, 5  ;;  %v4273_v43 = vld [vmem:[#allocation8 + $0x210] sm:$0xff]  }
 0x1eb   : > { %v1457_v5 = vor.u32 %v1455_v63, %v1454_v62  ;;  %v1530_v56 = vshrl.u32 %v3485_v31, 16  ;;  %v1393_v13 = vsel %vm4907_vm8, %v3544_v50, %v1392_v3  ;;  %v5094_v8 = vcombine.high %v5083_v6, %v5083_v6 }
 0x1ec   : > { %v3490_v11 = vcombine.low %v751_v1, %v1112_v15  ;;  %v3496_v12 = vsel %vm3459_vm6, %v752_v9, %v1112_v15  ;;  %v1525_v36 = vshrl.u32 %v3479_v4, 16  ;;  %v1533_v23 = vshll.u32 %v3485_v31, 16 }
 0x1ed   : > { %v1458_v57 = vsel %vm4907_vm8, %v3549_v38, %v1457_v5  ;;  %v1532_v29 = vrot.slane %v1530_v56, 7  ;;  %v1595_v9 = vshrl.u32 %v3496_v12, 16  ;;  %v1598_v24 = vshll.u32 %v3496_v12, 16  ;;  %v4279_v56 = vld [vmem:[#allocation8 + $0x218] sm:$0xff]  }
 0x1ee   : > { %v3587_v60 = vcombine.low %v1393_v13, %v1458_v57  ;;  %v3588_v19 = vcombine.high %v1393_v13, %v1458_v57  ;;  %v3555_v41 = vrot.slane %v1525_v36, 11  ;;  %v1590_v44 = vshrl.u32 %v3490_v11, 16 }
 0x1ef   : > { %v3424_v25 = vcombine.low %v4918_v37, %v4918_v37  ;;  %v1535_v28 = vor.u32 %v1533_v23, %v1532_v29  ;;  %v3425_v16 = vcombine.low %v4932_v51, %v4932_v51  ;;  %v3432_v52 = vcombine.low %v4918_v37, %v738_v59  ;;  %v753_v23 = vld [vmem:[#allocation2 + $0x48] sm:$0x8] }
 0x1f0   : > { %2764 = vmatprep.mubr.bf16.mxu1 %v3588_v19  ;;  %v3433_v30 = vcombine.low %v4932_v51, %v739_v18  ;;  %v3560_v32 = vrot.slane %v1590_v44, 11  ;;  %v1597_v39 = vrot.slane %v1595_v9, 7  ;;  %v3442_v61 = vcombine.low %v5102_v0, %v5102_v0 }
 0x1f1   : > { %2765 = vmatmul.mubr.bf16.vlgmr.msra.gmra.mrb[24].mxu1 %v3587_v60  ;;  %v962_v45 = vshrl.u32 %v3424_v25, 16  ;;  %v965_v46 = vshll.u32 %v3424_v25, 16  ;;  %v1536_v42 = vsel %vm4907_vm8, %v3555_v41, %v1535_v28  ;;  %v970_v47 = vshrl.u32 %v3425_v16, 16  ;;  %v4280_v28 = vld [vmem:[#allocation8 + $0x220] sm:$0xff]  }
 0x1f2   : > { %3980 = vmatpush3.bf16.msra.mxu1 %v5048_v49  ;;  %v973_v50 = vshll.u32 %v3425_v16, 16  ;;  %v1035_v55 = vrot.slane %v3432_v52, 5  ;;  %v1600_v37 = vor.u32 %v1598_v24, %v1597_v39  ;;  %v1036_v40 = vrot.slane %v3433_v30, 5  ;;  %v755_v30 = vld [vmem:[#allocation2 + $0x54] sm:$0x8] }
 0x1f3   : > { %v964_v53 = vrot.slane %v962_v45, 4  ;;  %v967_v51 = vrot.slane %v965_v46, 5  ;;  %3981 = vmatprep.subr.bf16.mxu1 %v4272_v26  ;;  %v972_v10 = vrot.slane %v970_v47, 4  ;;  %v3443_v7 = vcombine.low %v5104_v34, %v5104_v34 }
 0x1f4   : > { %v975_v33 = vrot.slane %v973_v50, 5  ;;  %v1601_v49 = vsel %vm4907_vm8, %v3560_v32, %v1600_v37  ;;  %v5117_v63 = vcombine.low %v4966_v17, %v4966_v17  ;;  %v5121_v1 = vcombine.low %v4983_v35, %v4983_v35 }
 0x1f5   : > { %v968_v62 = vor.u32 %v967_v51, %v964_v53  ;;  %v3599_v14 = vcombine.high %v1536_v42, %v1601_v49  ;;  %v3598_v3 = vcombine.low %v1536_v42, %v1601_v49  ;;  %v1114_v15 = vshrl.u32 %v3442_v61, 16 }
 0x1f6   : > { %v976_v2 = vor.u32 %v975_v33, %v972_v10  ;;  %3982 = vmatpush3.bf16.msra.mxu1 %v4272_v26  ;;  %v1117_v38 = vshll.u32 %v3442_v61, 16  ;;  %v1122_v5 = vshrl.u32 %v3443_v7, 16  ;;  %v1125_v13 = vshll.u32 %v3443_v7, 16  ;;  %v740_v33 = vld [vmem:[#allocation2 + $0x44] sm:$0x1] }
 0x1f7   : > { %v3478_v4 = vcombine.low %v968_v62, %v1035_v55  ;;  %v3483_v31 = vcombine.high %v968_v62, %v1035_v55  ;;  %3983 = vmatprep.subr.bf16.mxu1 %v4273_v43  ;;  %2837 = vmatprep.mubr.bf16.mxu0 %v3599_v14  ;;  %v1116_v36 = vrot.slane %v1114_v15, 4  ;;  %v978_v32 = vshrl.u32 %v5117_v63, 16  ;;  %v4286_v61 = vld [vmem:[#allocation8 + $0x228] sm:$0xff]   ;;  %v741_v14 = vld [vmem:[#allocation2 + $0x50] sm:$0x1] }
 0x1f8   : > { %v3489_v11 = vcombine.low %v976_v2, %v1036_v40  ;;  %v3494_v12 = vcombine.high %v976_v2, %v1036_v40  ;;  %2838 = vmatmul.mubr.bf16.gmra.mrb[20].mxu0 %v3598_v3  ;;  %v1119_v18 = vrot.slane %v1117_v38, 5  ;;  %v1124_v44 = vrot.slane %v1122_v5, 4 }
 0x1f9   : > { %v1512_v57 = vshrl.u32 %v3478_v4, 16  ;;  %v1517_v29 = vshrl.u32 %v3483_v31, 16  ;;  %v1520_v59 = vshll.u32 %v3483_v31, 16  ;;  %v1127_v26 = vrot.slane %v1125_v13, 5 }
 0x1fa   : > { %v1577_v60 = vshrl.u32 %v3489_v11, 16  ;;  %v1582_v19 = vshrl.u32 %v3494_v12, 16  ;;  %v1585_v41 = vshll.u32 %v3494_v12, 16  ;;  %3984 = vmatpush3.bf16.msra.mxu1 %v4273_v43  ;;  %v1120_v25 = vor.u32 %v1119_v18, %v1116_v36  ;;  %v5134_v11 = vld [vmem:[#allocation2 + $0x64] sm:$0xf] }
 0x1fb   : > { %v3554_v9 = vrot.slane %v1512_v57, 11  ;;  %v1519_v24 = vrot.slane %v1517_v29, 7  ;;  %3985 = vmatprep.subr.bf16.mxu1 %v4279_v56  ;;  %v981_v39 = vshll.u32 %v5117_v63, 16  ;;  %v1128_v46 = vor.u32 %v1127_v26, %v1124_v44  ;;  %v5139_v29 = vld [vmem:[#allocation2 + $0x5c] sm:$0x1] }
 0x1fc   : > { %v3559_v16 = vrot.slane %v1577_v60, 11  ;;  %v1584_v52 = vrot.slane %v1582_v19, 7  ;;  %v3501_v42 = vcombine.low %v753_v23, %v1120_v25  ;;  %v3507_v47 = vsel %vm3459_vm6, %v5102_v0, %v1120_v25 }
 0x1fd   : > { %v1522_v45 = vor.u32 %v1520_v59, %v1519_v24  ;;  %v1660_v55 = vshrl.u32 %v3507_v47, 16  ;;  %v1663_v37 = vshll.u32 %v3507_v47, 16  ;;  %v980_v53 = vrot.slane %v978_v32, 4  ;;  %v4287_v59 = vld [vmem:[#allocation8 + $0x230] sm:$0xff]  }
 0x1fe   : > { %v1587_v50 = vor.u32 %v1585_v41, %v1584_v52  ;;  %3986 = vmatpush3.bf16.msra.mxu1 %v4279_v56  ;;  %v3512_v40 = vcombine.low %v755_v30, %v1128_v46  ;;  %v3518_v43 = vsel %vm3459_vm6, %v5104_v34, %v1128_v46  ;;  %v1655_v10 = vshrl.u32 %v3501_v42, 16  ;;  %v4290_v30 = vld [vmem:[#allocation8 + $0x238] sm:$0xff]  }
 0x1ff   : > { %v1523_v51 = vsel %vm4907_vm8, %v3554_v9, %v1522_v45  ;;  %3987 = vmatprep.subr.bf16.mxu1 %v4280_v28  ;;  %v1662_v49 = vrot.slane %v1660_v55, 7  ;;  %v1725_v62 = vshrl.u32 %v3518_v43, 16  ;;  %v1728_v63 = vshll.u32 %v3518_v43, 16 }
 0x200   : > { %v1588_v7 = vsel %vm4907_vm8, %v3559_v16, %v1587_v50  ;;  %v3565_v15 = vrot.slane %v1655_v10, 11  ;;  %v1720_v4 = vshrl.u32 %v3512_v40, 16  ;;  %v983_v5 = vrot.slane %v981_v39, 5 }
 0x201   : > { %v3597_v2 = vcombine.high %v1523_v51, %v1588_v7  ;;  %v3596_v3 = vcombine.low %v1523_v51, %v1588_v7  ;;  %v1665_v31 = vor.u32 %v1663_v37, %v1662_v49  ;;  %v1727_v38 = vrot.slane %v1725_v62, 7 }
 0x202   : > { %v986_v56 = vshrl.u32 %v5121_v1, 16  ;;  %3988 = vmatpush3.bf16.msra.mxu1 %v4280_v28  ;;  %v3570_v12 = vrot.slane %v1720_v4, 11  ;;  %v989_v36 = vshll.u32 %v5121_v1, 16  ;;  %v3434_v13 = vcombine.low %v4966_v17, %v740_v33 }
 0x203   : > { %2772 = vmatprep.mubr.bf16.mxu1 %v3597_v2  ;;  %v3435_v57 = vcombine.low %v4983_v35, %v741_v14  ;;  %3989 = vmatprep.subr.bf16.mxu1 %v4286_v61  ;;  %v1666_v18 = vsel %vm4907_vm8, %v3565_v15, %v1665_v31  ;;  %v1730_v60 = vor.u32 %v1728_v63, %v1727_v38  ;;  %v743_v15 = vld [vmem:[#allocation2 + $0x68] sm:$0x1] }
 0x204   : > { %2773 = vmatmul.mubr.bf16.gmra.mrb[28].mxu1 %v3596_v3  ;;  %v984_v19 = vor.u32 %v983_v5, %v980_v53  ;;  %v988_v41 = vrot.slane %v986_v56, 4  ;;  %v991_v23 = vrot.slane %v989_v36, 5  ;;  %v1037_v44 = vrot.slane %v3434_v13, 5 }
 0x205   : > { %v1038_v9 = vrot.slane %v3435_v57, 5  ;;  %v3444_v1 = vcombine.low %v5134_v11, %v5134_v11  ;;  %v1731_v17 = vsel %vm4907_vm8, %v3570_v12, %v1730_v60  ;;  %v3428_v35 = vcombine.low %v5016_v54, %v5016_v54  ;;  %v761_v12 = vld [vmem:[#allocation2 + $0x20] sm:$0x1] }
 0x206   : > { %v3429_v24 = vcombine.low %v5023_v22, %v5023_v22  ;;  %v3436_v25 = vcombine.low %v5016_v54, %v5139_v29  ;;  %3990 = vmatpush3.bf16.msra.mxu1 %v4286_v61  ;;  %v3608_v26 = vcombine.high %v1666_v18, %v1731_v17  ;;  %v992_v28 = vor.u32 %v991_v23, %v988_v41  ;;  %v757_v61 = vld [vmem:[#allocation2 + $0x60] sm:$0x8] }
 0x207   : > { %v3500_v16 = vcombine.low %v984_v19, %v1037_v44  ;;  %v3505_v52 = vcombine.high %v984_v19, %v1037_v44  ;;  %3991 = vmatprep.subr.bf16.mxu1 %v4287_v59  ;;  %v3607_v32 = vcombine.low %v1666_v18, %v1731_v17  ;;  %v1130_v39 = vshrl.u32 %v3444_v1, 16 }
 0x208   : > { %v1133_v45 = vshll.u32 %v3444_v1, 16  ;;  %v994_v46 = vshrl.u32 %v3428_v35, 16  ;;  %2845 = vmatprep.mubr.bf16.mxu0 %v3608_v26  ;;  %v3511_v42 = vcombine.low %v992_v28, %v1038_v9  ;;  %v3516_v47 = vcombine.high %v992_v28, %v1038_v9  ;;  %v762_v9 = vld [vmem:[#allocation2 + $0x2c] sm:$0x1] }
 0x209   : > { %v1642_v50 = vshrl.u32 %v3500_v16, 16  ;;  %v1647_v55 = vshrl.u32 %v3505_v52, 16  ;;  %v1650_v37 = vshll.u32 %v3505_v52, 16  ;;  %2846 = vmatmul.mubr.bf16.gmra.mrb[24].mxu0 %v3607_v32  ;;  %v1132_v53 = vrot.slane %v1130_v39, 4 }
 0x20a   : > { %v1135_v54 = vrot.slane %v1133_v45, 5  ;;  %v996_v51 = vrot.slane %v994_v46, 4  ;;  %3992 = vmatpush3.bf16.msra.mxu1 %v4287_v59  ;;  %v1707_v10 = vshrl.u32 %v3511_v42, 16  ;;  %v1712_v33 = vshrl.u32 %v3516_v47, 16 }
 0x20b   : > { %v3564_v40 = vrot.slane %v1642_v50, 11  ;;  %v1649_v43 = vrot.slane %v1647_v55, 7  ;;  %3993 = vmatprep.subr.bf16.mxu1 %v4290_v30  ;;  %v1715_v7 = vshll.u32 %v3516_v47, 16  ;;  %v997_v62 = vshll.u32 %v3428_v35, 16 }
 0x20c   : > { %v1136_v49 = vor.u32 %v1135_v54, %v1132_v53  ;;  %v1002_v63 = vshrl.u32 %v3429_v24, 16  ;;  %v3569_v2 = vrot.slane %v1707_v10, 11  ;;  %v1714_v3 = vrot.slane %v1712_v33, 7 }
 0x20d   : > { %v1652_v14 = vor.u32 %v1650_v37, %v1649_v43  ;;  %v1005_v4 = vshll.u32 %v3429_v24, 16  ;;  %v999_v5 = vrot.slane %v997_v62, 5  ;;  %v3437_v19 = vcombine.low %v5023_v22, %v743_v15 }
 0x20e   : > { %v3523_v31 = vcombine.low %v757_v61, %v1136_v49  ;;  %v3529_v38 = vsel %vm3459_vm6, %v5134_v11, %v1136_v49  ;;  %v1004_v56 = vrot.slane %v1002_v63, 4  ;;  %3994 = vmatpush3.bf16.msra.mxu1 %v4290_v30  ;;  %v1717_v13 = vor.u32 %v1715_v7, %v1714_v3 }
 0x20f   : > { %v1653_v36 = vsel %vm4907_vm8, %v3564_v40, %v1652_v14  ;;  %v1790_v57 = vshrl.u32 %v3529_v38, 16  ;;  %v1793_v29 = vshll.u32 %v3529_v38, 16  ;;  %v1000_v18 = vor.u32 %v999_v5, %v996_v51 }
 0x210   : > { %v1785_v59 = vshrl.u32 %v3523_v31, 16  ;;  %v1007_v60 = vrot.slane %v1005_v4, 5  ;;  %v1718_v41 = vsel %vm4907_vm8, %v3569_v2, %v1717_v13  ;;  %v1039_v44 = vrot.slane %v3436_v25, 5 }
 0x211   : > { %v1792_v23 = vrot.slane %v1790_v57, 7  ;;  %v3446_v1 = vcombine.low %v5038_v20, %v761_v12  ;;  %v3606_v17 = vcombine.high %v1653_v36, %v1718_v41  ;;  %v3605_v35 = vcombine.low %v1653_v36, %v1718_v41  ;;  %v765_v12 = vld [vmem:[#allocation2 + $0x50] sm:$0x1] }
 0x212   : > { %v3575_v24 = vrot.slane %v1785_v59, 11  ;;  %v1008_v26 = vor.u32 %v1007_v60, %v1004_v56  ;;  %v1040_v16 = vrot.slane %v3437_v19, 5  ;;  %v3522_v52 = vcombine.low %v1000_v18, %v1039_v44 }
 0x213   : > { %v1795_v28 = vor.u32 %v1793_v29, %v1792_v23  ;;  %v3527_v30 = vcombine.high %v1000_v18, %v1039_v44  ;;  %v5163_v32 = vcombine.high %v5085_v58, %v5085_v58  ;;  %2780 = vmatprep.mubr.bf16.mxu1 %v3606_v17  ;;  %v3447_v22 = vcombine.low %v5040_v21, %v762_v9  ;;  %v766_v29 = vld [vmem:[#allocation2 + $0x5c] sm:$0x1] }
 0x214   : > { %v1169_v39 = vrot.slane %v3446_v1, 5  ;;  %v3480_v25 = vcombine.low %v5083_v6, %v5083_v6  ;;  %2781 = vmatmul.mubr.bf16.gmra.mrb[32].mxu1 %v3605_v35  ;;  %v3533_v45 = vcombine.low %v1008_v26, %v1040_v16  ;;  %v3538_v46 = vcombine.high %v1008_v26, %v1040_v16  ;;  %v767_v1 = vld [vmem:[#allocation2 + $0x68] sm:$0x1] }
 0x215   : > { %v1796_v20 = vsel %vm4907_vm8, %v3575_v24, %v1795_v28  ;;  %v1772_v42 = vshrl.u32 %v3522_v52, 16  ;;  %v1777_v50 = vshrl.u32 %v3527_v30, 16  ;;  %v1780_v55 = vshll.u32 %v3527_v30, 16  ;;  %v768_v28 = vld [vmem:[#allocation2 + $0x74] sm:$0x1] }
 0x216   : > { %v3617_v47 = vcombine.high %v1796_v20, %v5080_v48  ;;  %v3616_v37 = vcombine.low %v1796_v20, %v5080_v48  ;;  %v1837_v54 = vshrl.u32 %v3533_v45, 16  ;;  %v1842_v21 = vshrl.u32 %v3538_v46, 16 }
 0x217   : > { %v3574_v53 = vrot.slane %v1772_v42, 11  ;;  %v1845_v51 = vshll.u32 %v3538_v46, 16  ;;  %v1779_v40 = vrot.slane %v1777_v50, 7  ;;  %v1170_v6 = vrot.slane %v3447_v22, 5  ;;  %v4309_v46 = vld [vmem:[#allocation2 + $0x70] sm:$0xf] }
 0x218   : > { %2853 = vmatprep.mubr.bf16.mxu0 %v3617_v47  ;;  %v3458_v43 = vcombine.low %v1169_v39, %v1169_v39  ;;  %v3464_v10 = vcombine.high %v1169_v39, %v1169_v39  ;;  %v3579_v33 = vrot.slane %v1837_v54, 11  ;;  %v1844_v61 = vrot.slane %v1842_v21, 7 }
 0x219   : > { %2854 = vmatmul.mubr.bf16.gmra.mrb[28].mxu0 %v3616_v37  ;;  %v3491_v7 = vcombine.low %v5085_v58, %v5085_v58  ;;  %v1543_v49 = vshrl.u32 %v5094_v8, 16  ;;  %v1782_v62 = vor.u32 %v1780_v55, %v1779_v40  ;;  %v3469_v63 = vcombine.low %v1170_v6, %v1170_v6 }
 0x21a   : > { %v3475_v48 = vcombine.high %v1170_v6, %v1170_v6  ;;  %v1408_v14 = vshrl.u32 %v3458_v43, 16  ;;  %v1847_v2 = vor.u32 %v1845_v51, %v1844_v61  ;;  %v1413_v3 = vshrl.u32 %v3464_v10, 16 }
 0x21b   : > { %v1416_v15 = vshll.u32 %v3464_v10, 16  ;;  %v1538_v4 = vshrl.u32 %v3480_v25, 16  ;;  %v1783_v31 = vsel %vm4907_vm8, %v3574_v53, %v1782_v62  ;;  %v1473_v5 = vshrl.u32 %v3469_v63, 16 }
 0x21c   : > { %v3546_v38 = vrot.slane %v1408_v14, 11  ;;  %v1478_v56 = vshrl.u32 %v3475_v48, 16  ;;  %v1848_v58 = vsel %vm4907_vm8, %v3579_v33, %v1847_v2  ;;  %v1415_v36 = vrot.slane %v1413_v3, 7 }
 0x21d   : > { %v1481_v13 = vshll.u32 %v3475_v48, 16  ;;  %v1545_v57 = vrot.slane %v1543_v49, 7  ;;  %v3615_v59 = vcombine.high %v1783_v31, %v1848_v58  ;;  %v3614_v18 = vcombine.low %v1783_v31, %v1848_v58 }
 0x21e   : > { %v3551_v60 = vrot.slane %v1473_v5, 11  ;;  %v1480_v19 = vrot.slane %v1478_v56, 7  ;;  %v1418_v41 = vor.u32 %v1416_v15, %v1415_v36  ;;  %v1546_v23 = vshll.u32 %v5094_v8, 16 }
 0x21f   : > { %v1603_v44 = vshrl.u32 %v3491_v7, 16  ;;  %v1608_v9 = vshrl.u32 %v5163_v32, 16  ;;  %2788 = vmatprep.mubr.bf16.mxu1 %v3615_v59  ;;  %v1611_v35 = vshll.u32 %v5163_v32, 16  ;;  %v3450_v24 = vcombine.low %v5102_v0, %v765_v12 }
 0x220   : > { %v1483_v17 = vor.u32 %v1481_v13, %v1480_v19  ;;  %v3451_v26 = vcombine.low %v5104_v34, %v766_v29  ;;  %2789 = vmatmul.mubr.bf16.gmra.mrb[36].mxu1 %v3614_v18  ;;  %v1419_v16 = vsel %vm4907_vm8, %v3546_v38, %v1418_v41  ;;  %v1548_v52 = vor.u32 %v1546_v23, %v1545_v57 }
 0x221   : > { %v3561_v30 = vrot.slane %v1603_v44, 11  ;;  %v1610_v8 = vrot.slane %v1608_v9, 7  ;;  %v1173_v39 = vrot.slane %v3450_v24, 5  ;;  %v3452_v20 = vcombine.low %v5134_v11, %v767_v1  ;;  %v4293_v9 = vld [vmem:[#allocation9] sm:$0xff]   ;;  %v4294_v1 = vld [vmem:[#allocation9 + $0x8] sm:$0xff]  }
 0x222   : > { %v1484_v22 = vsel %vm4907_vm8, %v3551_v60, %v1483_v17  ;;  %v1174_v25 = vrot.slane %v3451_v26, 5  ;;  %v3556_v45 = vrot.slane %v1538_v4, 11  ;;  %v3453_v34 = vcombine.low %v4309_v46, %v768_v28  ;;  %4003 = vmatprep.subr.bf16.mxu0 %v4293_v9  ;;  %v4295_v17 = vld [vmem:[#allocation9 + $0x10] sm:$0xff]   ;;  %v4297_v24 = vld [vmem:[#allocation9 + $0x20] sm:$0xff]   ;;  %v4298_v26 = vld [vmem:[#allocation9 + $0x28] sm:$0xff]  }
 0x223   : > { %v3591_v32 = vcombine.low %v1419_v16, %v1484_v22  ;;  %v1613_v0 = vor.u32 %v1611_v35, %v1610_v8  ;;  %v3502_v42 = vcombine.low %v1173_v39, %v1173_v39  ;;  %v3508_v47 = vcombine.high %v1173_v39, %v1173_v39  ;;  %4004 = vmatpush3.bf16.msra.mxu0 %v4293_v9  ;;  %v4296_v35 = vld [vmem:[#allocation9 + $0x18] sm:$0xff]   ;;  %v3582_v39 = vld [vmem:[%s5274_s4] ss:$0 sm:$0xff] }
 0x224   : > { %v3513_v50 = vcombine.low %v1174_v25, %v1174_v25  ;;  %v3519_v55 = vcombine.high %v1174_v25, %v1174_v25  ;;  %v1549_v37 = vsel %vm4907_vm8, %v3556_v45, %v1548_v52  ;;  %v1175_v54 = vrot.slane %v3452_v20, 5  ;;  %4005 = vmatprep.subr.bf16.mxu0 %v4294_v1  ;;  %v4300_v28 = vld [vmem:[#allocation9 + $0x38] sm:$0xff]  }
 0x225   : > { %3995 = vmatprep.mubr.bf16.mxu1 %v3591_v32  ;;  %v1614_v53 = vsel %vm4907_vm8, %v3561_v30, %v1613_v0  ;;  %v1176_v21 = vrot.slane %v3453_v34, 5  ;;  %v1668_v11 = vshrl.u32 %v3502_v42, 16  ;;  %v1673_v40 = vshrl.u32 %v3508_v47, 16 }
 0x226   : > { %v3600_v51 = vcombine.low %v1549_v37, %v1614_v53  ;;  %v1676_v6 = vshll.u32 %v3508_v47, 16  ;;  %v1733_v43 = vshrl.u32 %v3513_v50, 16  ;;  %v1738_v10 = vshrl.u32 %v3519_v55, 16  ;;  %v5204_v37 = vld [vmem:[#allocation11] sm:$0xff]  }
 0x227   : > { %v1741_v33 = vshll.u32 %v3519_v55, 16  ;;  %v3524_v61 = vcombine.low %v1175_v54, %v1175_v54  ;;  %v3566_v7 = vrot.slane %v1668_v11, 11  ;;  %v1675_v49 = vrot.slane %v1673_v40, 7  ;;  %4006 = vmatpush3.bf16.msra.mxu0 %v4294_v1 }
 0x228   : > { %v3530_v62 = vcombine.high %v1175_v54, %v1175_v54  ;;  %v3535_v63 = vcombine.low %v1176_v21, %v1176_v21  ;;  %3996 = vmatmul.mubr.bf16.vlgmr.msra.gmra.mrb[40].mxu1 %v3600_v51  ;;  %v3571_v48 = vrot.slane %v1733_v43, 11  ;;  %v1740_v14 = vrot.slane %v1738_v10, 7  ;;  %4007 = vmatprep.subr.bf16.mxu0 %v4295_v17 }
 0x229   : > { %v3541_v2 = vcombine.high %v1176_v21, %v1176_v21  ;;  %v1798_v3 = vshrl.u32 %v3524_v61, 16  ;;  %v1678_v15 = vor.u32 %v1676_v6, %v1675_v49 }
 0x22a   : > { %v1803_v4 = vshrl.u32 %v3530_v62, 16  ;;  %v1806_v31 = vshll.u32 %v3530_v62, 16  ;;  %v1863_v38 = vshrl.u32 %v3535_v63, 16  ;;  %v1743_v5 = vor.u32 %v1741_v33, %v1740_v14 }
 0x22b   : > { %v1868_v56 = vshrl.u32 %v3541_v2, 16  ;;  %v1871_v12 = vshll.u32 %v3541_v2, 16  ;;  %v1679_v58 = vsel %vm4907_vm8, %v3566_v7, %v1678_v15  ;;  %v3576_v36 = vrot.slane %v1798_v3, 11  ;;  %4008 = vmatpush3.bf16.msra.mxu0 %v4295_v17 }
 0x22c   : > { %v1805_v13 = vrot.slane %v1803_v4, 7  ;;  %v1744_v57 = vsel %vm4907_vm8, %v3571_v48, %v1743_v5  ;;  %v3581_v29 = vrot.slane %v1863_v38, 11  ;;  %4009 = vmatprep.subr.bf16.mxu0 %v4296_v35 }
 0x22d   : > { %v1870_v59 = vrot.slane %v1868_v56, 7  ;;  %v3609_v18 = vcombine.low %v1679_v58, %v1744_v57 }
 0x22e   : > { %v1808_v60 = vor.u32 %v1806_v31, %v1805_v13 }
 0x22f   : > { %v1873_v19 = vor.u32 %v1871_v12, %v1870_v59  ;;  %3999 = vmatprep.mubr.bf16.mxu1 %v3609_v18  ;;  %4010 = vmatpush3.bf16.msra.mxu0 %v4296_v35 }
 0x230   : > { %v1809_v41 = vsel %vm4907_vm8, %v3576_v36, %v1808_v60  ;;  %4011 = vmatprep.subr.bf16.mxu0 %v4297_v24 }
 0x231   : > { %v1874_v23 = vsel %vm4907_vm8, %v3581_v29, %v1873_v19 }
 0x232   : > { %v3618_v44 = vcombine.low %v1809_v41, %v1874_v23 }
 0x233   : > { %4012 = vmatpush3.bf16.msra.mxu0 %v4297_v24 }
 0x234   : > { %4000 = vmatmul.mubr.bf16.gmra.mrb[44].mxu1 %v3618_v44  ;;  %4013 = vmatprep.subr.bf16.mxu0 %v4298_v26 }
 0x237   : > { %4014 = vmatpush3.bf16.msra.mxu0 %v4298_v26 }
 0x238   : > { %4015 = vmatprep.subr.bf16.mxu0 %v4299_v27 }
 0x23b   : > { %4016 = vmatpush3.bf16.msra.mxu0 %v4299_v27 }
 0x23c   : > { %4017 = vmatprep.subr.bf16.mxu0 %v4300_v28 }
 0x23f   : > { %4018 = vmatpush3.bf16.msra.mxu0 %v4300_v28 }
 0x240   : > { %4027 = vmatprep.subr.bf16.mxu0 %v5204_v37 }
 0x285   : > { %v3815_v16 = vpop.f32.mrb[0].mxu0 }
 0x286   : > { %v3816_v52 = vpop.f32.mrb[1].mxu0 }
 0x287   : > { %v3817_v8 = vadd.f32 %v3816_v52, %v3815_v16  ;;  %v3818_v22 = vpop.f32.mrb[2].mxu0 }
 0x288   : > { %v3775_v30 = vpop.f32.mrb[8].mxu1  ;;  %v3819_v20 = vpop.f32.mrb[3].mxu0 }
 0x289   : > { %v3776_v25 = vpop.f32.mrb[9].mxu1  ;;  %v3820_v0 = vadd.f32 %v3819_v20, %v3818_v22 }
 0x28a   : > { %v3777_v32 = vadd.f32 %v3776_v25, %v3775_v30  ;;  %v3778_v45 = vpop.f32.mrb[10].mxu1 }
 0x28b   : > { %v3779_v46 = vpop.f32.mrb[11].mxu1 }
 0x28c   : > { %v2637_v34 = vadd.f32 %v3777_v32, %v3582_v39  ;;  %v3780_v42 = vadd.f32 %v3779_v46, %v3778_v45 }
 0x28d   : > { %v3821_v50 = vpop.f32.mrb[4].mxu0 }
 0x28e   : > { %v2640_v47 = vadd.f32 %v3780_v42, %v3582_v39  ;;  %v2702_v55 = vadd.f32 %v3817_v8, %v2637_v34  ;;  %v3822_v53 = vpop.f32.mrb[5].mxu0 }
 0x28f   : > { %v3823_v54 = vadd.f32 %v3822_v53, %v3821_v50  ;;  %v3824_v21 = vpop.f32.mrb[6].mxu0 }
 0x290   : > { %v2705_v51 = vadd.f32 %v3820_v0, %v2640_v47  ;;  %v3825_v11 = vpop.f32.mrb[7].mxu0 }
 0x291   : > { %v3826_v40 = vadd.f32 %v3825_v11, %v3824_v21 }
 0x295   : > { %v3781_v6 = vpop.f32.mrb[12].mxu1 }
 0x296   : > { %v3782_v43 = vpop.f32.mrb[13].mxu1 }
 0x297   : > { %v3783_v10 = vadd.f32 %v3782_v43, %v3781_v6  ;;  %v3784_v33 = vpop.f32.mrb[14].mxu1 }
 0x298   : > { %v3785_v61 = vpop.f32.mrb[15].mxu1 }
 0x299   : > { %v2645_v7 = vadd.f32 %v3783_v10, %v3582_v39  ;;  %v3786_v49 = vadd.f32 %v3785_v61, %v3784_v33  ;;  %v3827_v62 = vpop.f32.mrb[8].mxu0 }
 0x29a   : > { %v3828_v48 = vpop.f32.mrb[9].mxu0 }
 0x29b   : > { %v2648_v63 = vadd.f32 %v3786_v49, %v3582_v39  ;;  %v2710_v14 = vadd.f32 %v3823_v54, %v2645_v7  ;;  %v3829_v2 = vadd.f32 %v3828_v48, %v3827_v62  ;;  %v3830_v3 = vpop.f32.mrb[10].mxu0 }
 0x29c   : > { %v3831_v15 = vpop.f32.mrb[11].mxu0 }
 0x29d   : > { %v2713_v4 = vadd.f32 %v3826_v40, %v2648_v63  ;;  %v3832_v31 = vadd.f32 %v3831_v15, %v3830_v3 }
 0x2a4   : > { %v3787_v38 = vpop.f32.mrb[16].mxu1 }
 0x2a5   : > { %v3788_v5 = vpop.f32.mrb[17].mxu1 }
 0x2a6   : > { %v3789_v56 = vadd.f32 %v3788_v5, %v3787_v38  ;;  %v3790_v12 = vpop.f32.mrb[18].mxu1 }
 0x2a7   : > { %v3791_v58 = vpop.f32.mrb[19].mxu1 }
 0x2a8   : > { %v2653_v36 = vadd.f32 %v3789_v56, %v3582_v39  ;;  %v3792_v13 = vadd.f32 %v3791_v58, %v3790_v12  ;;  %v3833_v57 = vpop.f32.mrb[12].mxu0 }
 0x2a9   : > { %v3834_v59 = vpop.f32.mrb[13].mxu0 }
 0x2aa   : > { %v2656_v29 = vadd.f32 %v3792_v13, %v3582_v39  ;;  %v2718_v18 = vadd.f32 %v3829_v2, %v2653_v36  ;;  %v3835_v60 = vadd.f32 %v3834_v59, %v3833_v57  ;;  %v3836_v19 = vpop.f32.mrb[14].mxu0 }
 0x2ab   : > { %v3837_v41 = vpop.f32.mrb[15].mxu0 }
 0x2ac   : > { %v2721_v23 = vadd.f32 %v3832_v31, %v2656_v29  ;;  %v3838_v44 = vadd.f32 %v3837_v41, %v3836_v19 }
 0x2b3   : > { %v3793_v9 = vpop.f32.mrb[20].mxu1 }
 0x2b4   : > { %v3794_v1 = vpop.f32.mrb[21].mxu1 }
 0x2b5   : > { %v3795_v17 = vadd.f32 %v3794_v1, %v3793_v9  ;;  %v3796_v35 = vpop.f32.mrb[22].mxu1 }
 0x2b6   : > { %v3797_v24 = vpop.f32.mrb[23].mxu1 }
 0x2b7   : > { %v2661_v26 = vadd.f32 %v3795_v17, %v3582_v39  ;;  %v3798_v27 = vadd.f32 %v3797_v24, %v3796_v35 }
 0x2b9   : > { %v2664_v28 = vadd.f32 %v3798_v27, %v3582_v39  ;;  %v3895_v16 = vpop.f32.mrb[16].mxu0  ;;  %v2726_v52 = vadd.f32 %v3835_v60, %v2661_v26 }
 0x2ba   : > { %v3896_v30 = vpop.f32.mrb[17].mxu0 }
 0x2bb   : > { %v3897_v8 = vadd.f32 %v3896_v30, %v3895_v16  ;;  %v3898_v22 = vpop.f32.mrb[18].mxu0  ;;  %v2729_v25 = vadd.f32 %v3838_v44, %v2664_v28 }
 0x2bc   : > { %v3899_v20 = vpop.f32.mrb[19].mxu0 }
 0x2bd   : > { %v3900_v32 = vadd.f32 %v3899_v20, %v3898_v22 }
 0x2c4   : > { %v3855_v45 = vpop.f32.mrb[24].mxu1 }
 0x2c5   : > { %v3856_v0 = vpop.f32.mrb[25].mxu1 }
 0x2c6   : > { %v3857_v46 = vadd.f32 %v3856_v0, %v3855_v45  ;;  %v3858_v34 = vpop.f32.mrb[26].mxu1 }
 0x2c7   : > { %v3859_v42 = vpop.f32.mrb[27].mxu1 }
 0x2c8   : > { %v2767_v47 = vadd.f32 %v3857_v46, %v2702_v55  ;;  %v3860_v50 = vadd.f32 %v3859_v42, %v3858_v34 }
 0x2ca   : > { %v2770_v53 = vadd.f32 %v3860_v50, %v2705_v51  ;;  %v2832_v54 = vadd.f32 %v3897_v8, %v2767_v47 }
 0x2cb   : > { %v3901_v21 = vpop.f32.mrb[20].mxu0 }
 0x2cc   : > { %v2835_v11 = vadd.f32 %v3900_v32, %v2770_v53  ;;  %v3902_v39 = vpop.f32.mrb[21].mxu0 }
 0x2cd   : > { %v3903_v40 = vadd.f32 %v3902_v39, %v3901_v21  ;;  %v3904_v6 = vpop.f32.mrb[22].mxu0 }
 0x2ce   : > { %v3905_v43 = vpop.f32.mrb[23].mxu0 }
 0x2cf   : > { %v3906_v10 = vadd.f32 %v3905_v43, %v3904_v6  ;;  %v4302_v6 = vld [vmem:[#allocation11 + $0x8] sm:$0xff]  }
 0x2d7   : > { %v3861_v33 = vpop.f32.mrb[28].mxu1 }
 0x2d8   : > { %v3862_v61 = vpop.f32.mrb[29].mxu1 }
 0x2d9   : > { %v3863_v7 = vadd.f32 %v3862_v61, %v3861_v33  ;;  %v3864_v49 = vpop.f32.mrb[30].mxu1  ;;  %v4303_v33 = vld [vmem:[#allocation11 + $0x10] sm:$0xff]  }
 0x2da   : > { %v3865_v62 = vpop.f32.mrb[31].mxu1 }
 0x2db   : > { %v2775_v63 = vadd.f32 %v3863_v7, %v2710_v14  ;;  %v3866_v48 = vadd.f32 %v3865_v62, %v3864_v49 }
 0x2dc   : > { %v3907_v3 = vpop.f32.mrb[24].mxu0 }
 0x2dd   : > { %v2778_v2 = vadd.f32 %v3866_v48, %v2713_v4  ;;  %v2840_v55 = vadd.f32 %v3903_v40, %v2775_v63  ;;  %v3908_v15 = vpop.f32.mrb[25].mxu0 }
 0x2de   : > { %v3909_v51 = vadd.f32 %v3908_v15, %v3907_v3  ;;  %v3910_v31 = vpop.f32.mrb[26].mxu0  ;;  %v4310_v15 = vld [vmem:[%s4825_s9] sm:$0xff]  }
 0x2df   : > { %v2843_v38 = vadd.f32 %v3906_v10, %v2778_v2  ;;  %v3911_v5 = vpop.f32.mrb[27].mxu0  ;;  %v4304_v2 = vld [vmem:[#allocation11 + $0x18] sm:$0xff]  }
 0x2e0   : > { %v3912_v56 = vadd.f32 %v3911_v5, %v3910_v31  ;;  %v4307_v31 = vld [vmem:[#allocation11 + $0x30] sm:$0xff]   ;;  %v4311_v5 = vld [vmem:[%s4825_s9 + $0x8] sm:$0xff]  }
 0x2e7   : > { %v3867_v12 = vpop.f32.mrb[32].mxu1 }
 0x2e8   : > { %v3868_v58 = vpop.f32.mrb[33].mxu1 }
 0x2e9   : > { %v3869_v36 = vadd.f32 %v3868_v58, %v3867_v12  ;;  %v3870_v13 = vpop.f32.mrb[34].mxu1  ;;  %v4313_v12 = vld [vmem:[%s4825_s9 + $0x18] sm:$0xff]   ;;  %v3691_v58 = vld [vmem:[%s5276_s6] ss:$0 sm:$0xff] }
 0x2ea   : > { %v3871_v57 = vpop.f32.mrb[35].mxu1 }
 0x2eb   : > { %v2783_v29 = vadd.f32 %v3869_v36, %v2718_v18  ;;  %v3872_v59 = vadd.f32 %v3871_v57, %v3870_v13  ;;  %v3700_v36 = vld [vmem:[%s5278_s8] ss:$0 sm:$0xff] }
 0x2ec   : > { %v3913_v60 = vpop.f32.mrb[28].mxu0  ;;  %v4057_v13 = vadd.f32 %v3700_v36, %v3691_v58 }
 0x2ed   : > { %v3914_v19 = vpop.f32.mrb[29].mxu0  ;;  %v2786_v14 = vadd.f32 %v3872_v59, %v2721_v23  ;;  %v2848_v44 = vadd.f32 %v3909_v51, %v2783_v29  ;;  %v4306_v51 = vld [vmem:[#allocation11 + $0x28] sm:$0xff]  }
 0x2ee   : > { %v3915_v41 = vadd.f32 %v3914_v19, %v3913_v60  ;;  %v3916_v4 = vpop.f32.mrb[30].mxu0 }
 0x2ef   : > { %v3917_v9 = vpop.f32.mrb[31].mxu0  ;;  %v2851_v17 = vadd.f32 %v3912_v56, %v2786_v14  ;;  %v4312_v56 = vld [vmem:[%s4825_s9 + $0x10] sm:$0xff]   ;;  %s5309_s9 = sld [smem:[#allocation19_spill]] }
 0x2f0   : > { %v3918_v1 = vadd.f32 %v3917_v9, %v3916_v4 }
 0x2f3   : > { %v3873_v35 = vpop.f32.mrb[36].mxu1 }
 0x2f4   : > { %v3874_v24 = vpop.f32.mrb[37].mxu1 }
 0x2f5   : > { %v3875_v26 = vadd.f32 %v3874_v24, %v3873_v35  ;;  %v3876_v27 = vpop.f32.mrb[38].mxu1  ;;  %s5226_s15 = scalar_lea.hbm %s5309_s9, %s3723_s23 }
 0x2f6   : > { %v3877_v28 = vpop.f32.mrb[39].mxu1 }
 0x2f7   : > { %v2791_v16 = vadd.f32 %v3875_v26, %v2726_v52  ;;  %v3878_v30 = vadd.f32 %v3877_v28, %v3876_v27 }
 0x2f9   : > { %v2794_v8 = vadd.f32 %v3878_v30, %v2729_v25  ;;  %v2856_v22 = vadd.f32 %v3915_v41, %v2791_v16 }
 0x2fb   : > { %v3997_v18 = vpop.f32.mrb[40].mxu1  ;;  %v2859_v20 = vadd.f32 %v3918_v1, %v2794_v8 }
 0x2fc   : > { %v2905_v32 = vadd.f32 %v3997_v18, %v2840_v55  ;;  %v2896_v45 = vpop.f32.mrb[41].mxu1 }
 0x2fd   : > { %v2897_v23 = vadd.f32 %v2896_v45, %v2832_v54  ;;  %v3998_v0 = vpop.f32.mrb[42].mxu1 }
 0x2fe   : > { %v2908_v46 = vadd.f32 %v3998_v0, %v2843_v38  ;;  %v2899_v34 = vpop.f32.mrb[43].mxu1  ;;  %v2929_v47 = vmax.f32 %v2905_v32, 0.0  ;;  %v4308_v38 = vld [vmem:[#allocation11 + $0x38] sm:$0xff]  }
 0x2ff   : > { %v2900_v42 = vadd.f32 %v2899_v34, %v2835_v11  ;;  %v2927_v53 = vmax.f32 %v2897_v23, 0.0 }
 0x300   : > { %v2930_v50 = vmax.f32 %v2908_v46, 0.0 }
 0x301   : > { %v2928_v21 = vmax.f32 %v2900_v42, 0.0 }
 0x302   : > { %v2936_v39 = vpack.c.bf16 %v2930_v50, %v2929_v47 }
 0x303   : > { %v2935_v40 = vpack.c.bf16 %v2928_v21, %v2927_v53 }
 0x305   : > { %4019 = vmatprep.mubr.bf16.mxu0 %v2935_v40 }
 0x306   : > { %4020 = vmatmul.mubr.bf16.vlgmr.msra.gmra.mrb[32].mxu0 %v2936_v39 }
 0x307   : > { %v4001_v52 = vpop.f32.mrb[44].mxu1  ;;  %4028 = vmatpush3.bf16.msra.mxu0 %v5204_v37  ;;  %v4305_v37 = vld [vmem:[#allocation11 + $0x20] sm:$0xff]  }
 0x308   : > { %v2921_v25 = vadd.f32 %v4001_v52, %v2856_v22  ;;  %v2912_v43 = vpop.f32.mrb[45].mxu1  ;;  %4029 = vmatprep.subr.bf16.mxu0 %v4302_v6 }
 0x309   : > { %v2913_v10 = vadd.f32 %v2912_v43, %v2848_v44  ;;  %v4002_v54 = vpop.f32.mrb[46].mxu1 }
 0x30a   : > { %v2924_v61 = vadd.f32 %v4002_v54, %v2859_v20  ;;  %v2915_v11 = vpop.f32.mrb[47].mxu1  ;;  %v2933_v49 = vmax.f32 %v2921_v25, 0.0 }
 0x30b   : > { %v2916_v7 = vadd.f32 %v2915_v11, %v2851_v17  ;;  %4030 = vmatpush3.bf16.msra.mxu0 %v4302_v6  ;;  %v2931_v63 = vmax.f32 %v2913_v10, 0.0 }
 0x30c   : > { %v2934_v62 = vmax.f32 %v2924_v61, 0.0  ;;  %4031 = vmatprep.subr.bf16.mxu0 %v4303_v33 }
 0x30d   : > { %v2932_v48 = vmax.f32 %v2916_v7, 0.0 }
 0x30e   : > { %v2938_v3 = vpack.c.bf16 %v2934_v62, %v2933_v49 }
 0x30f   : > { %v2937_v55 = vpack.c.bf16 %v2932_v48, %v2931_v63  ;;  %4032 = vmatpush3.bf16.msra.mxu0 %v4303_v33 }
 0x310   : > { %4033 = vmatprep.subr.bf16.mxu0 %v4304_v2 }
 0x311   : > { %4023 = vmatprep.mubr.bf16.mxu0 %v2937_v55 }
 0x312   : > { %4024 = vmatmul.mubr.bf16.gmra.mrb[36].mxu0 %v2938_v3 }
 0x313   : > { %4043 = vmatprep.mubr.bf16.mxu0 %v4310_v15  ;;  %4034 = vmatpush3.bf16.msra.mxu0 %v4304_v2 }
 0x314   : > { %4035 = vmatprep.subr.bf16.mxu0 %v4305_v37 }
 0x317   : > { %4036 = vmatpush3.bf16.msra.mxu0 %v4305_v37 }
 0x318   : > { %4037 = vmatprep.subr.bf16.mxu0 %v4306_v51 }
 0x31b   : > { %4038 = vmatpush3.bf16.msra.mxu0 %v4306_v51 }
 0x31c   : > { %4039 = vmatprep.subr.bf16.mxu0 %v4307_v31 }
 0x31f   : > { %4040 = vmatpush3.bf16.msra.mxu0 %v4307_v31 }
 0x320   : > { %4041 = vmatprep.subr.bf16.mxu0 %v4308_v38 }
 0x323   : > { %4042 = vmatpush3.bf16.msra.mxu0 %v4308_v38 }
 0x326   : > { %4044 = vmatmul.mubr.bf16.vlgmr.msra.gmra.mrb[32].mxu0 %v4311_v5 }
 0x327   : > { %4047 = vmatprep.mubr.bf16.mxu0 %v4312_v56 }
 0x32e   : > { %4048 = vmatmul.mubr.bf16.gmra.mrb[36].mxu0 %v4313_v12 }
 0x3f9   : > { %v4045_v57 = vpop.f32.mrb[32].mxu0 }
 0x3fa   : > { %v4051_v29 = vadd.f32 %v4045_v57, %v3691_v58  ;;  %v3180_v59 = vpop.f32.mrb[33].mxu0 }
 0x3fb   : > { %v4053_v60 = vadd.f32 %v3691_v58, %v3180_v59  ;;  %v4046_v19 = vpop.f32.mrb[34].mxu0 }
 0x3fc   : > { %v4052_v14 = vadd.f32 %v4051_v29, %v3700_v36  ;;  %v4056_v41 = vadd.f32 %v4057_v13, %v4046_v19  ;;  %v3183_v4 = vpop.f32.mrb[35].mxu0 }
 0x3fd   : > { %v4054_v44 = vadd.f32 %v4053_v60, %v3700_v36  ;;  %v4058_v9 = vadd.f32 %v4057_v13, %v3183_v4 }
 0x3fe   : > { %v3221_v1 = vmax.f32 %v4052_v14, 0.0  ;;  %v3222_v17 = vmax.f32 %v4056_v41, 0.0 }
 0x3ff   : > { %v3219_v35 = vmax.f32 %v4054_v44, 0.0  ;;  %v3220_v24 = vmax.f32 %v4058_v9, 0.0 }
 0x400   : > { %v3732_v26 = vpack.c.bf16 %v3222_v17, %v3221_v1 }
 0x401   : > { %v3727_v27 = vpack.c.bf16 %v3220_v24, %v3219_v35  ;;  %v4049_v28 = vpop.f32.mrb[36].mxu0 }
 0x402   : > { %3744 = vst [vmem:[%s408_s18 + $0x8] sm:$0xff] %v3732_v26   ;;  %v4060_v16 = vadd.f32 %v4057_v13, %v4049_v28  ;;  %v3196_v30 = vpop.f32.mrb[37].mxu0 }
 0x403   : > { %3728 = vst [vmem:[%s408_s18] sm:$0xff] %v3727_v27   ;;  %v4062_v8 = vadd.f32 %v4057_v13, %v3196_v30  ;;  %v4050_v22 = vpop.f32.mrb[38].mxu0 }
 0x404   : > { %v4064_v18 = vadd.f32 %v4057_v13, %v4050_v22  ;;  %v3199_v20 = vpop.f32.mrb[39].mxu0  ;;  %v3225_v45 = vmax.f32 %v4060_v16, 0.0 }
 0x405   : > { %v4066_v32 = vadd.f32 %v4057_v13, %v3199_v20  ;;  %v3223_v0 = vmax.f32 %v4062_v8, 0.0 }
 0x406   : > { %v3226_v23 = vmax.f32 %v4064_v18, 0.0 }
 0x407   : > { %v3224_v46 = vmax.f32 %v4066_v32, 0.0 }
 0x408   : > { %v3742_v34 = vpack.c.bf16 %v3226_v23, %v3225_v45 }
 0x409   : > { %v3737_v42 = vpack.c.bf16 %v3224_v46, %v3223_v0 }
 0x40a   : > { %3746 = vst [vmem:[%s408_s18 + $0x18] sm:$0xff] %v3742_v34  }
 0x40b   : > { %3745 = vst [vmem:[%s408_s18 + $0x10] sm:$0xff] %v3737_v42  }
 0x40c   : > { %4469 = shalt.err (!%p4466_p13)
}
 0x40d   : > { %s4470_s22 = scalar_lea.hbm %s5226_s15, 512  ;;  %s4474_s18 = scalar_lea.hbm %s5309_s9, 1024 }
 0x40e   : > { %p4471_p9 = scmp.ne.s32.totalorder %s5226_s15, %s4470_s22  ;;  %p4475_p4 = scmp.lt.u32.totalorder %s5226_s15, %s5309_s9 }
 0x40f   : > { %p4476_p8 = scmp.lt.u32.totalorder %s4474_s18, %s4470_s22  ;;  %p4478_p3 = scmp.lt.u32.totalorder %s4470_s22, %s5226_s15 }
 0x410   : > { %p4472_p0 = pnand %p4471_p9, %p4764_p10 }
 0x411   : > { %p4477_p6 = por %p4476_p8, %p4475_p4 }
 0x412   : > { %p4473_p11 = pneg %p4472_p0 }
 0x413   : > { %p4479_p5 = por %p4478_p3, %p4477_p6 }
 0x415   : > { %p4480_p7 = pnand %p4479_p5, %p4473_p11 }
 0x417   : > { %4483 = shalt.err (!%p4480_p7)
}
 0x418   : > { %s4541_s24 = smov 64   ;;  %s4542_s13 = smov 4  }
 0x419   : > { %4093 = dma.vmem_to_hbm [thread:$0]  (%p4764_p10), %s5221_s16, 512, %s5226_s15, %s3244_s17, %s4541_s24, %s4541_s24, %s4542_s13  }
 0x41a PF: > { %s5310_s25 = sld [smem:[#allocation17_spill]]  ;;  %s5311_s26 = sld [smem:[#allocation18_spill]] }
 0x41b   : > { %p5313_p1 = scmp.ge.s32.totalorder %s4530_s12, 2 }
 0x420   : > { %s3272_s19 = sand.u32 1, %s5310_s25   ;;  %p5312_p12 = scmp.ne.s32.totalorder %s5311_s26, 0 }
 0x421   : > { %s3273_s22 = scalar_lea.sflag [#allocation5], %s3272_s19 }
 0x422   : > { %p4113_p2 = pnand %p5313_p1, %p5312_p12 }
 0x424   : > { %4513 = dma.done.wait (!%p4113_p2), %s3273_s22, 512  }
 0x425   : > { %4515 = vsyncadd (!%p4113_p2), %s3273_s22, 4294966784  ;;  %p24_p13 = scmp.ge.s32.totalorder %s4754_s14, 4   ;;  %s5314_s30 = smov %s4522_s10 }
 0x426   : > { %s5315_s10 = smov %s4526_s11  ;;  %s5316_s11 = smov %s4770_s28 }
 0x427   : > { %s5317_s12 = smov %s4754_s14  ;;  %26 = sbr.rel (!%p24_p13) target bundleno = 9 (0x9), region = 120 }
 0x42e   :  { %3278 = vsyncpa [#allocation4], 1 }
 0x42f   :  { %3280 = vsyncpa [#allocation4 + $0x1], 1 }
 0x430   :  { %3281 = vsyncpa [#allocation7], 1 }
 0x431   :  { %3282 = vsyncpa [#allocation10], 1 }
 0x432   :  { %3283 = vsyncpa [#allocation5], 1 }
 0x433   :  { %3285 = vsyncpa [#allocation5 + $0x1], 1 }

</bundles_post_ra>
